<compile_context>
chip_gen: v5e
topology: v5e:2x2
jax: 0.10.0
libtpu: 0.0.40
codegen_flags: <defaults>
</compile_context>

<pallas_src>
import math

import jax
import jax.numpy as jnp
from jax.experimental import pallas as pl
from jax.experimental.pallas import tpu as pltpu

# ------------------------- small synthetic config ----------------------------
B = 2              # batch
S = 16             # sequence length
H = 32             # config.hidden_size
NH = 4             # config.num_attention_heads
HD = H // NH       # head_dim = 8
I = 64             # config.intermediate_size
NUM_BUCKETS = 32   # config.num_buckets
MAX_DISTANCE = 16  # config.max_bucket_distance
EPS = 1e-5         # config.layer_norm_eps
SCALING = HD ** -0.5


# ------------------------------ kernel helpers --------------------------------
def _layer_norm(v, g, b):
    mu = jnp.mean(v, axis=-1, keepdims=True)
    var = jnp.mean(jnp.square(v - mu), axis=-1, keepdims=True)
    return (v - mu) * jax.lax.rsqrt(var + EPS) * g + b


def _gelu_exact(x):
    # ACT2FN["gelu"] == exact (erf) GELU
    return 0.5 * x * (1.0 + jax.lax.erf(x * (1.0 / math.sqrt(2.0))))


# -------------------------------- Pallas kernel --------------------------------
def wavlm_layer_kernel(
    x_ref, pb_ref,
    ln1g_ref, ln1b_ref,
    wqkv_ref, bqkv_ref,
    wg_ref, bg_ref, gc_ref,
    ow_ref, ob_ref,
    ln2g_ref, ln2b_ref,
    fiw_ref, fib_ref, fow_ref, fob_ref,
    out_ref,
):
    # static shapes derived from the refs
    bs, h = x_ref.shape                  # (B*S, H)
    nhb, s, _ = pb_ref.shape             # (NH*B, S, S)
    b = bs // s
    nh = nhb // b
    hd = h // nh
    scaling = hd ** -0.5

    x = x_ref[...]                       # [B*S, H]

    # ---- pre-attention LayerNorm ----
    hs = _layer_norm(x, ln1g_ref[...], ln1b_ref[...])

    # ---- fused QKV projection (one MXU matmul instead of three) ----
    qkv = jnp.dot(hs, wqkv_ref[...], preferred_element_type=jnp.float32) + bqkv_ref[...]
    q = qkv[:, 0 * h:1 * h] * scaling
    k = qkv[:, 1 * h:2 * h]
    v = qkv[:, 2 * h:3 * h]

    # ---- gated relative-position gate: all heads in one matmul + one sigmoid ----
    # (gru_rel_pos_linear and the (..,2,4).sum(-1) are pre-folded into wg/bg)
    pg = jnp.dot(hs, wg_ref[...], preferred_element_type=jnp.float32) + bg_ref[...]
    sg = jax.nn.sigmoid(pg)                                        # [B*S, 2*NH]
    gate = sg[:, :nh] * (sg[:, nh:] * gc_ref[...] - 1.0) + 2.0     # [B*S, NH]

    # ---- head-major relayout: (head, batch) becomes the dot_general batch dim ----
    def to_heads(t):                     # [B*S, H] -> [NH*B, S, HD]
        t3 = t.reshape(b, s, h)
        return jnp.concatenate(
            [t3[:, :, n * hd:(n + 1) * hd] for n in range(nh)], axis=0)

    qh = to_heads(q)
    kh = to_heads(k)
    vh = to_heads(v)

    gate3 = gate.reshape(b, s, nh)
    gate_h = jnp.concatenate(
        [gate3[:, :, n:n + 1] for n in range(nh)], axis=0)         # [NH*B, S, 1]

    # ---- batched attention over all NH*B (head, batch) pairs ----
    scores = jax.lax.dot_general(
        qh, kh, (((2,), (2,)), ((0,), (0,))),
        preferred_element_type=jnp.float32)                        # [NH*B, S, S]
    scores = scores + gate_h * pb_ref[...]
    scores = scores - jnp.max(scores, axis=-1, keepdims=True)
    p = jnp.exp(scores)
    attn = p / jnp.sum(p, axis=-1, keepdims=True)
    ctx_h = jax.lax.dot_general(
        attn, vh, (((2,), (1,)), ((0,), (0,))),
        preferred_element_type=jnp.float32)                        # [NH*B, S, HD]

    # ---- back to [B*S, H] and out-projection ----
    ctx = jnp.concatenate(
        [ctx_h[n * b:(n + 1) * b] for n in range(nh)], axis=2)     # [B, S, H]
    ctx = ctx.reshape(bs, h)
    attn_out = jnp.dot(ctx, ow_ref[...],
                       preferred_element_type=jnp.float32) + ob_ref[...]

    # ---- residual 1 ----
    h1 = x + attn_out

    # ---- final LayerNorm + feed-forward + residual 2 ----
    h2 = _layer_norm(h1, ln2g_ref[...], ln2b_ref[...])
    ff = jnp.dot(h2, fiw_ref[...], preferred_element_type=jnp.float32) + fib_ref[...]
    ff = _gelu_exact(ff)
    ff = jnp.dot(ff, fow_ref[...], preferred_element_type=jnp.float32) + fob_ref[...]

    out_ref[...] = h1 + ff


# --------------------------- glue: position bias ------------------------------
def compute_position_bias(seq_len, rel_embed):
    """rel_embed: [NUM_BUCKETS, NH]  ->  [NH, seq_len, seq_len].

    # TODO(synk): the integer bucketing + embedding gather stays in plain JAX
    # (computed once and reused by every layer); a dynamic integer gather has
    # no benefit inside the Pallas kernel at this size.
    """
    context = jnp.arange(seq_len, dtype=jnp.int32)[:, None]
    memory = jnp.arange(seq_len, dtype=jnp.int32)[None, :]
    relative_position = memory - context

    nb = NUM_BUCKETS // 2
    rel_buckets = (relative_position > 0).astype(jnp.int32) * nb
    rel_abs = jnp.abs(relative_position)
    max_exact = nb // 2
    is_small = rel_abs < max_exact

    # clamp to >= 1 so the masked-out branch never evaluates log(0)
    rel_large = jnp.log(jnp.maximum(rel_abs, 1).astype(jnp.float32) / max_exact)
    rel_large = rel_large / math.log(MAX_DISTANCE / max_exact)
    rel_large = rel_large * (nb - max_exact)
    rel_large = (max_exact + rel_large).astype(jnp.int32)
    rel_large = jnp.minimum(rel_large, nb - 1)

    rel_buckets = rel_buckets + jnp.where(is_small, rel_abs, rel_large)
    values = rel_embed[rel_buckets]                 # [S, S, NH]
    return jnp.transpose(values, (2, 0, 1))         # [NH, S, S]


# ------------------------------ pallas_call wrapper ---------------------------
def wavlm_encoder_layer(x, params, position_bias=None):
    if position_bias is None:
        position_bias = compute_position_bias(x.shape[1], params["rel_attn_embed"])

    bx, sx, hx = x.shape
    nh = position_bias.shape[0]
    hd = hx // nh
    inter = params["fiw"].shape[1]

    # ---- one-time host-side parameter fusion (would be cached in practice) ----
    wqkv = jnp.concatenate([params["qw"], params["kw"], params["vw"]], axis=1)   # [H, 3H]
    bqkv = jnp.concatenate([params["qb"], params["kb"], params["vb"]])[None, :]  # [1, 3H]

    # fold gru_rel_pos_linear + the 4-way sums into block-diagonal gate weights
    wa = params["gru_w"][:, 0:4].sum(axis=1)          # [HD]
    wb = params["gru_w"][:, 4:8].sum(axis=1)          # [HD]
    eye = jnp.eye(nh, dtype=jnp.float32)
    wg = jnp.concatenate([jnp.kron(eye, wa[:, None]),
                          jnp.kron(eye, wb[:, None])], axis=1)                   # [H, 2*NH]
    bg = jnp.concatenate([jnp.full((nh,), params["gru_b"][0:4].sum()),
                          jnp.full((nh,), params["gru_b"][4:8].sum())])[None, :] # [1, 2*NH]
    gc = params["gru_c"][None, :]                                                # [1, NH]

    # position bias tiled to the (head, batch) ordering used inside the kernel
    pb_tiled = jnp.repeat(position_bias, bx, axis=0)                             # [NH*B, S, S]

    x2 = x.reshape(bx * sx, hx)
    row = lambda p: p[None, :]

    operands = (
        x2, pb_tiled,
        row(params["ln1_g"]), row(params["ln1_b"]),
        wqkv, bqkv, wg, bg, gc,
        params["ow"], row(params["ob"]),
        row(params["ln2_g"]), row(params["ln2_b"]),
        params["fiw"], row(params["fib"]),
        params["fow"], row(params["fob"]),
    )

    vmem = pl.BlockSpec(memory_space=pltpu.MemorySpace.VMEM)
    flops = (2 * bx * sx * hx * (3 * hx + 2 * nh + hx + 2 * inter)
             + 4 * nh * bx * sx * sx * hd)
    transcendentals = nh * bx * sx * sx + bx * sx * inter + 2 * bx * sx * nh
    bytes_accessed = 4 * (sum(int(o.size) for o in operands) + bx * sx * hx)

    out = pl.pallas_call(
        wavlm_layer_kernel,
        out_shape=jax.ShapeDtypeStruct((bx * sx, hx), jnp.float32),
        in_specs=[vmem] * len(operands),
        out_specs=vmem,
        cost_estimate=pl.CostEstimate(flops=flops,
                                      transcendentals=transcendentals,
                                      bytes_accessed=bytes_accessed),
    )(*operands)
    return out.reshape(bx, sx, hx), position_bias


# ------------------------------ pure-JAX reference ----------------------------
def reference_forward(x, params, position_bias):
    def ln(v, g, b):
        mu = v.mean(-1, keepdims=True)
        var = ((v - mu) ** 2).mean(-1, keepdims=True)
        return (v - mu) / jnp.sqrt(var + EPS) * g + b

    hs = ln(x, params["ln1_g"], params["ln1_b"])
    q = hs @ params["qw"] + params["qb"]
    k = hs @ params["kw"] + params["kb"]
    v = hs @ params["vw"] + params["vb"]

    gh = hs.reshape(B, S, NH, HD)
    proj = gh @ params["gru_w"] + params["gru_b"]                      # [B,S,NH,8]
    proj = proj.reshape(B, S, NH, 2, 4).sum(-1)                        # [B,S,NH,2]
    gates = jax.nn.sigmoid(proj)
    gate_a, gate_b = gates[..., 0], gates[..., 1]                      # [B,S,NH]
    gate = gate_a * (gate_b * params["gru_c"] - 1.0) + 2.0             # [B,S,NH]
    gpb = gate.transpose(0, 2, 1)[..., None] * position_bias[None]     # [B,NH,S,S]

    q4 = (q.reshape(B, S, NH, HD) * SCALING).transpose(0, 2, 1, 3)
    k4 = k.reshape(B, S, NH, HD).transpose(0, 2, 1, 3)
    v4 = v.reshape(B, S, NH, HD).transpose(0, 2, 1, 3)
    scores = jnp.einsum("bhqd,bhkd->bhqk", q4, k4) + gpb
    attn = jax.nn.softmax(scores, axis=-1)
    ctx = jnp.einsum("bhqk,bhkd->bhqd", attn, v4).transpose(0, 2, 1, 3).reshape(B, S, H)
    attn_out = ctx @ params["ow"] + params["ob"]
    h1 = x + attn_out

    h2 = ln(h1, params["ln2_g"], params["ln2_b"])
    ff = h2 @ params["fiw"] + params["fib"]
    ff = 0.5 * ff * (1.0 + jax.lax.erf(ff / jnp.sqrt(2.0)))
    ff = ff @ params["fow"] + params["fob"]
    return h1 + ff


# ----------------------------------- main --------------------------------------
if __name__ == "__main__":
    key = jax.random.PRNGKey(0)
    keys = jax.random.split(key, 16)

    def init_w(k, shape, scale=0.05):
        return (scale * jax.random.normal(k, shape)).astype(jnp.float32)

    params = {
        "ln1_g": jnp.ones((H,), jnp.float32),
        "ln1_b": jnp.zeros((H,), jnp.float32),
        "qw": init_w(keys[0], (H, H)), "qb": init_w(keys[1], (H,)),
        "kw": init_w(keys[2], (H, H)), "kb": init_w(keys[3], (H,)),
        "vw": init_w(keys[4], (H, H)), "vb": init_w(keys[5], (H,)),
        "ow": init_w(keys[6], (H, H)), "ob": init_w(keys[7], (H,)),
        "gru_w": init_w(keys[8], (HD, 8)), "gru_b": init_w(keys[9], (8,)),
        "gru_c": jnp.ones((NH,), jnp.float32),   # nn.Parameter(torch.ones(1, NH, 1, 1))
        "ln2_g": jnp.ones((H,), jnp.float32),
        "ln2_b": jnp.zeros((H,), jnp.float32),
        "fiw": init_w(keys[10], (H, I)), "fib": init_w(keys[11], (I,)),
        "fow": init_w(keys[12], (I, H)), "fob": init_w(keys[13], (H,)),
        "rel_attn_embed": init_w(keys[14], (NUM_BUCKETS, NH)),
    }

    x = jax.random.normal(keys[15], (B, S, H), dtype=jnp.float32)

    out, pos_bias = wavlm_encoder_layer(x, params)
    out = jax.block_until_ready(out)

    ref = reference_forward(x, params, pos_bias)
    assert out.shape == (B, S, H)
    assert jnp.allclose(out, ref, atol=2e-4, rtol=2e-4), float(jnp.max(jnp.abs(out - ref)))

    print("KERNEL_OK")
</pallas_src>

<mosaic_0001>
module attributes {stable_mosaic.version = 11 : i64} {
  func.func @wavlm_layer_kernel(%arg0: memref<32x32xf32, #tpu.memory_space<vmem>>, %arg1: memref<8x16x16xf32, #tpu.memory_space<vmem>>, %arg2: memref<1x32xf32, #tpu.memory_space<vmem>>, %arg3: memref<1x32xf32, #tpu.memory_space<vmem>>, %arg4: memref<32x96xf32, #tpu.memory_space<vmem>>, %arg5: memref<1x96xf32, #tpu.memory_space<vmem>>, %arg6: memref<32x8xf32, #tpu.memory_space<vmem>>, %arg7: memref<1x8xf32, #tpu.memory_space<vmem>>, %arg8: memref<1x4xf32, #tpu.memory_space<vmem>>, %arg9: memref<32x32xf32, #tpu.memory_space<vmem>>, %arg10: memref<1x32xf32, #tpu.memory_space<vmem>>, %arg11: memref<1x32xf32, #tpu.memory_space<vmem>>, %arg12: memref<1x32xf32, #tpu.memory_space<vmem>>, %arg13: memref<32x64xf32, #tpu.memory_space<vmem>>, %arg14: memref<1x64xf32, #tpu.memory_space<vmem>>, %arg15: memref<64x32xf32, #tpu.memory_space<vmem>>, %arg16: memref<1x32xf32, #tpu.memory_space<vmem>>, %arg17: memref<32x32xf32, #tpu.memory_space<vmem>>) attributes {dimension_semantics = [], scalar_prefetch = 0 : i64, scratch_operands = 0 : i64, tpu.core_type = #tpu.core_type<tc>} {
    %c0 = arith.constant 0 : index
    %c0_0 = arith.constant 0 : index
    %0 = vector.load %arg0[%c0, %c0_0] : memref<32x32xf32, #tpu.memory_space<vmem>>, vector<32x32xf32>
    %c0_1 = arith.constant 0 : index
    %c0_2 = arith.constant 0 : index
    %1 = vector.load %arg2[%c0_1, %c0_2] : memref<1x32xf32, #tpu.memory_space<vmem>>, vector<1x32xf32>
    %c0_3 = arith.constant 0 : index
    %c0_4 = arith.constant 0 : index
    %2 = vector.load %arg3[%c0_3, %c0_4] : memref<1x32xf32, #tpu.memory_space<vmem>>, vector<1x32xf32>
    %cst = arith.constant dense<0.000000e+00> : vector<32xf32>
    %3 = vector.multi_reduction <add>, %0, %cst [1] : vector<32x32xf32> to vector<32xf32>
    %4 = vector.shape_cast %3 : vector<32xf32> to vector<32x1xf32>
    %cst_5 = arith.constant 3.200000e+01 : f32
    %5 = vector.broadcast %cst_5 : f32 to vector<32x1xf32>
    %6 = arith.divf %4, %5 : vector<32x1xf32>
    %7 = vector.broadcast %6 : vector<32x1xf32> to vector<32x32xf32>
    %8 = arith.subf %0, %7 : vector<32x32xf32>
    %9 = arith.mulf %8, %8 : vector<32x32xf32>
    %cst_6 = arith.constant dense<0.000000e+00> : vector<32xf32>
    %10 = vector.multi_reduction <add>, %9, %cst_6 [1] : vector<32x32xf32> to vector<32xf32>
    %11 = vector.shape_cast %10 : vector<32xf32> to vector<32x1xf32>
    %cst_7 = arith.constant 3.200000e+01 : f32
    %12 = vector.broadcast %cst_7 : f32 to vector<32x1xf32>
    %13 = arith.divf %11, %12 : vector<32x1xf32>
    %14 = vector.broadcast %6 : vector<32x1xf32> to vector<32x32xf32>
    %15 = arith.subf %0, %14 : vector<32x32xf32>
    %cst_8 = arith.constant 9.99999974E-6 : f32
    %16 = vector.broadcast %cst_8 : f32 to vector<32x1xf32>
    %17 = arith.addf %13, %16 : vector<32x1xf32>
    %18 = math.rsqrt %17 : vector<32x1xf32>
    %19 = vector.broadcast %18 : vector<32x1xf32> to vector<32x32xf32>
    %20 = arith.mulf %15, %19 : vector<32x32xf32>
    %21 = vector.broadcast %1 : vector<1x32xf32> to vector<32x32xf32>
    %22 = arith.mulf %20, %21 : vector<32x32xf32>
    %23 = vector.broadcast %2 : vector<1x32xf32> to vector<32x32xf32>
    %24 = arith.addf %22, %23 : vector<32x32xf32>
    %c0_9 = arith.constant 0 : index
    %c0_10 = arith.constant 0 : index
    %25 = vector.load %arg4[%c0_9, %c0_10] : memref<32x96xf32, #tpu.memory_space<vmem>>, vector<32x96xf32>
    %cst_11 = arith.constant dense<0.000000e+00> : vector<32x96xf32>
    %26 = tpu.matmul %24, %25, %cst_11 {dimension_numbers = #tpu.dot_dimension_numbers<[1], [0], [0], [1], [0, 0, 1, 1], [], []>} : vector<32x32xf32>, vector<32x96xf32>, vector<32x96xf32> -> vector<32x96xf32>
    %c0_12 = arith.constant 0 : index
    %c0_13 = arith.constant 0 : index
    %27 = vector.load %arg5[%c0_12, %c0_13] : memref<1x96xf32, #tpu.memory_space<vmem>>, vector<1x96xf32>
    %28 = vector.broadcast %27 : vector<1x96xf32> to vector<32x96xf32>
    %29 = arith.addf %26, %28 : vector<32x96xf32>
    %30 = vector.extract_strided_slice %29 {offsets = [0, 0], sizes = [32, 32], strides = [1, 1]} : vector<32x96xf32> to vector<32x32xf32>
    %cst_14 = arith.constant 0.353553385 : f32
    %31 = vector.broadcast %cst_14 : f32 to vector<32x32xf32>
    %32 = arith.mulf %30, %31 : vector<32x32xf32>
    %33 = vector.extract_strided_slice %29 {offsets = [0, 32], sizes = [32, 32], strides = [1, 1]} : vector<32x96xf32> to vector<32x32xf32>
    %34 = vector.extract_strided_slice %29 {offsets = [0, 64], sizes = [32, 32], strides = [1, 1]} : vector<32x96xf32> to vector<32x32xf32>
    %c0_15 = arith.constant 0 : index
    %c0_16 = arith.constant 0 : index
    %35 = vector.load %arg6[%c0_15, %c0_16] : memref<32x8xf32, #tpu.memory_space<vmem>>, vector<32x8xf32>
    %cst_17 = arith.constant dense<0.000000e+00> : vector<32x8xf32>
    %36 = tpu.matmul %24, %35, %cst_17 {dimension_numbers = #tpu.dot_dimension_numbers<[1], [0], [0], [1], [0, 0, 1, 1], [], []>} : vector<32x32xf32>, vector<32x8xf32>, vector<32x8xf32> -> vector<32x8xf32>
    %c0_18 = arith.constant 0 : index
    %c0_19 = arith.constant 0 : index
    %37 = vector.load %arg7[%c0_18, %c0_19] : memref<1x8xf32, #tpu.memory_space<vmem>>, vector<1x8xf32>
    %38 = vector.broadcast %37 : vector<1x8xf32> to vector<32x8xf32>
    %39 = arith.addf %36, %38 : vector<32x8xf32>
    %40 = arith.negf %39 : vector<32x8xf32>
    %41 = math.exp %40 : vector<32x8xf32>
    %cst_20 = arith.constant 1.000000e+00 : f32
    %42 = vector.broadcast %cst_20 : f32 to vector<32x8xf32>
    %43 = arith.addf %42, %41 : vector<32x8xf32>
    %44 = arith.divf %42, %43 : vector<32x8xf32>
    %45 = vector.extract_strided_slice %44 {offsets = [0, 0], sizes = [32, 4], strides = [1, 1]} : vector<32x8xf32> to vector<32x4xf32>
    %46 = vector.extract_strided_slice %44 {offsets = [0, 4], sizes = [32, 4], strides = [1, 1]} : vector<32x8xf32> to vector<32x4xf32>
    %c0_21 = arith.constant 0 : index
    %c0_22 = arith.constant 0 : index
    %47 = vector.load %arg8[%c0_21, %c0_22] : memref<1x4xf32, #tpu.memory_space<vmem>>, vector<1x4xf32>
    %48 = vector.broadcast %47 : vector<1x4xf32> to vector<32x4xf32>
    %49 = arith.mulf %46, %48 : vector<32x4xf32>
    %cst_23 = arith.constant 1.000000e+00 : f32
    %50 = vector.broadcast %cst_23 : f32 to vector<32x4xf32>
    %51 = arith.subf %49, %50 : vector<32x4xf32>
    %52 = arith.mulf %45, %51 : vector<32x4xf32>
    %cst_24 = arith.constant 2.000000e+00 : f32
    %53 = vector.broadcast %cst_24 : f32 to vector<32x4xf32>
    %54 = arith.addf %52, %53 : vector<32x4xf32>
    %55 = vector.shape_cast %32 : vector<32x32xf32> to vector<2x16x32xf32>
    %56 = vector.extract_strided_slice %55 {offsets = [0, 0, 0], sizes = [2, 16, 8], strides = [1, 1, 1]} : vector<2x16x32xf32> to vector<2x16x8xf32>
    %57 = vector.extract_strided_slice %55 {offsets = [0, 0, 8], sizes = [2, 16, 8], strides = [1, 1, 1]} : vector<2x16x32xf32> to vector<2x16x8xf32>
    %58 = vector.extract_strided_slice %55 {offsets = [0, 0, 16], sizes = [2, 16, 8], strides = [1, 1, 1]} : vector<2x16x32xf32> to vector<2x16x8xf32>
    %59 = vector.extract_strided_slice %55 {offsets = [0, 0, 24], sizes = [2, 16, 8], strides = [1, 1, 1]} : vector<2x16x32xf32> to vector<2x16x8xf32>
    %60 = tpu.concatenate %56, %57, %58, %59 in 0 : vector<2x16x8xf32>, vector<2x16x8xf32>, vector<2x16x8xf32>, vector<2x16x8xf32> -> vector<8x16x8xf32>
    %61 = vector.shape_cast %33 : vector<32x32xf32> to vector<2x16x32xf32>
    %62 = vector.extract_strided_slice %61 {offsets = [0, 0, 0], sizes = [2, 16, 8], strides = [1, 1, 1]} : vector<2x16x32xf32> to vector<2x16x8xf32>
    %63 = vector.extract_strided_slice %61 {offsets = [0, 0, 8], sizes = [2, 16, 8], strides = [1, 1, 1]} : vector<2x16x32xf32> to vector<2x16x8xf32>
    %64 = vector.extract_strided_slice %61 {offsets = [0, 0, 16], sizes = [2, 16, 8], strides = [1, 1, 1]} : vector<2x16x32xf32> to vector<2x16x8xf32>
    %65 = vector.extract_strided_slice %61 {offsets = [0, 0, 24], sizes = [2, 16, 8], strides = [1, 1, 1]} : vector<2x16x32xf32> to vector<2x16x8xf32>
    %66 = tpu.concatenate %62, %63, %64, %65 in 0 : vector<2x16x8xf32>, vector<2x16x8xf32>, vector<2x16x8xf32>, vector<2x16x8xf32> -> vector<8x16x8xf32>
    %67 = vector.shape_cast %34 : vector<32x32xf32> to vector<2x16x32xf32>
    %68 = vector.extract_strided_slice %67 {offsets = [0, 0, 0], sizes = [2, 16, 8], strides = [1, 1, 1]} : vector<2x16x32xf32> to vector<2x16x8xf32>
    %69 = vector.extract_strided_slice %67 {offsets = [0, 0, 8], sizes = [2, 16, 8], strides = [1, 1, 1]} : vector<2x16x32xf32> to vector<2x16x8xf32>
    %70 = vector.extract_strided_slice %67 {offsets = [0, 0, 16], sizes = [2, 16, 8], strides = [1, 1, 1]} : vector<2x16x32xf32> to vector<2x16x8xf32>
    %71 = vector.extract_strided_slice %67 {offsets = [0, 0, 24], sizes = [2, 16, 8], strides = [1, 1, 1]} : vector<2x16x32xf32> to vector<2x16x8xf32>
    %72 = tpu.concatenate %68, %69, %70, %71 in 0 : vector<2x16x8xf32>, vector<2x16x8xf32>, vector<2x16x8xf32>, vector<2x16x8xf32> -> vector<8x16x8xf32>
    %73 = vector.shape_cast %54 : vector<32x4xf32> to vector<2x16x4xf32>
    %74 = vector.extract_strided_slice %73 {offsets = [0, 0, 0], sizes = [2, 16, 1], strides = [1, 1, 1]} : vector<2x16x4xf32> to vector<2x16x1xf32>
    %75 = vector.extract_strided_slice %73 {offsets = [0, 0, 1], sizes = [2, 16, 1], strides = [1, 1, 1]} : vector<2x16x4xf32> to vector<2x16x1xf32>
    %76 = vector.extract_strided_slice %73 {offsets = [0, 0, 2], sizes = [2, 16, 1], strides = [1, 1, 1]} : vector<2x16x4xf32> to vector<2x16x1xf32>
    %77 = vector.extract_strided_slice %73 {offsets = [0, 0, 3], sizes = [2, 16, 1], strides = [1, 1, 1]} : vector<2x16x4xf32> to vector<2x16x1xf32>
    %78 = tpu.concatenate %74, %75, %76, %77 in 0 : vector<2x16x1xf32>, vector<2x16x1xf32>, vector<2x16x1xf32>, vector<2x16x1xf32> -> vector<8x16x1xf32>
    %cst_25 = arith.constant dense<0.000000e+00> : vector<8x16x16xf32>
    %79 = tpu.matmul %60, %66, %cst_25 {dimension_numbers = #tpu.dot_dimension_numbers<[2], [2], [1], [1], [0, 0, 0, 1, 1, 1], [0], [0]>} : vector<8x16x8xf32>, vector<8x16x8xf32>, vector<8x16x16xf32> -> vector<8x16x16xf32>
    %c0_26 = arith.constant 0 : index
    %c0_27 = arith.constant 0 : index
    %c0_28 = arith.constant 0 : index
    %80 = vector.load %arg1[%c0_26, %c0_27, %c0_28] : memref<8x16x16xf32, #tpu.memory_space<vmem>>, vector<8x16x16xf32>
    %81 = vector.broadcast %78 : vector<8x16x1xf32> to vector<8x16x16xf32>
    %82 = arith.mulf %81, %80 : vector<8x16x16xf32>
    %83 = arith.addf %79, %82 : vector<8x16x16xf32>
    %cst_29 = arith.constant dense<0xFF800000> : vector<8x16xf32>
    %84 = vector.multi_reduction <maximumf>, %83, %cst_29 [2] : vector<8x16x16xf32> to vector<8x16xf32>
    %85 = vector.shape_cast %84 : vector<8x16xf32> to vector<8x16x1xf32>
    %86 = vector.broadcast %85 : vector<8x16x1xf32> to vector<8x16x16xf32>
    %87 = arith.subf %83, %86 : vector<8x16x16xf32>
    %88 = math.exp %87 : vector<8x16x16xf32>
    %cst_30 = arith.constant dense<0.000000e+00> : vector<8x16xf32>
    %89 = vector.multi_reduction <add>, %88, %cst_30 [2] : vector<8x16x16xf32> to vector<8x16xf32>
    %90 = vector.shape_cast %89 : vector<8x16xf32> to vector<8x16x1xf32>
    %91 = vector.broadcast %90 : vector<8x16x1xf32> to vector<8x16x16xf32>
    %92 = arith.divf %88, %91 : vector<8x16x16xf32>
    %cst_31 = arith.constant dense<0.000000e+00> : vector<8x16x8xf32>
    %93 = tpu.matmul %92, %72, %cst_31 {dimension_numbers = #tpu.dot_dimension_numbers<[2], [1], [1], [2], [0, 0, 0, 1, 1, 2], [0], [0]>} : vector<8x16x16xf32>, vector<8x16x8xf32>, vector<8x16x8xf32> -> vector<8x16x8xf32>
    %94 = vector.extract_strided_slice %93 {offsets = [0, 0, 0], sizes = [2, 16, 8], strides = [1, 1, 1]} : vector<8x16x8xf32> to vector<2x16x8xf32>
    %95 = vector.extract_strided_slice %93 {offsets = [2, 0, 0], sizes = [2, 16, 8], strides = [1, 1, 1]} : vector<8x16x8xf32> to vector<2x16x8xf32>
    %96 = vector.extract_strided_slice %93 {offsets = [4, 0, 0], sizes = [2, 16, 8], strides = [1, 1, 1]} : vector<8x16x8xf32> to vector<2x16x8xf32>
    %97 = vector.extract_strided_slice %93 {offsets = [6, 0, 0], sizes = [2, 16, 8], strides = [1, 1, 1]} : vector<8x16x8xf32> to vector<2x16x8xf32>
    %98 = tpu.concatenate %94, %95, %96, %97 in 2 : vector<2x16x8xf32>, vector<2x16x8xf32>, vector<2x16x8xf32>, vector<2x16x8xf32> -> vector<2x16x32xf32>
    %99 = vector.shape_cast %98 : vector<2x16x32xf32> to vector<32x32xf32>
    %c0_32 = arith.constant 0 : index
    %c0_33 = arith.constant 0 : index
    %100 = vector.load %arg9[%c0_32, %c0_33] : memref<32x32xf32, #tpu.memory_space<vmem>>, vector<32x32xf32>
    %cst_34 = arith.constant dense<0.000000e+00> : vector<32x32xf32>
    %101 = tpu.matmul %99, %100, %cst_34 {dimension_numbers = #tpu.dot_dimension_numbers<[1], [0], [0], [1], [0, 0, 1, 1], [], []>} : vector<32x32xf32>, vector<32x32xf32>, vector<32x32xf32> -> vector<32x32xf32>
    %c0_35 = arith.constant 0 : index
    %c0_36 = arith.constant 0 : index
    %102 = vector.load %arg10[%c0_35, %c0_36] : memref<1x32xf32, #tpu.memory_space<vmem>>, vector<1x32xf32>
    %103 = vector.broadcast %102 : vector<1x32xf32> to vector<32x32xf32>
    %104 = arith.addf %101, %103 : vector<32x32xf32>
    %105 = arith.addf %0, %104 : vector<32x32xf32>
    %c0_37 = arith.constant 0 : index
    %c0_38 = arith.constant 0 : index
    %106 = vector.load %arg11[%c0_37, %c0_38] : memref<1x32xf32, #tpu.memory_space<vmem>>, vector<1x32xf32>
    %c0_39 = arith.constant 0 : index
    %c0_40 = arith.constant 0 : index
    %107 = vector.load %arg12[%c0_39, %c0_40] : memref<1x32xf32, #tpu.memory_space<vmem>>, vector<1x32xf32>
    %cst_41 = arith.constant dense<0.000000e+00> : vector<32xf32>
    %108 = vector.multi_reduction <add>, %105, %cst_41 [1] : vector<32x32xf32> to vector<32xf32>
    %109 = vector.shape_cast %108 : vector<32xf32> to vector<32x1xf32>
    %cst_42 = arith.constant 3.200000e+01 : f32
    %110 = vector.broadcast %cst_42 : f32 to vector<32x1xf32>
    %111 = arith.divf %109, %110 : vector<32x1xf32>
    %112 = vector.broadcast %111 : vector<32x1xf32> to vector<32x32xf32>
    %113 = arith.subf %105, %112 : vector<32x32xf32>
    %114 = arith.mulf %113, %113 : vector<32x32xf32>
    %cst_43 = arith.constant dense<0.000000e+00> : vector<32xf32>
    %115 = vector.multi_reduction <add>, %114, %cst_43 [1] : vector<32x32xf32> to vector<32xf32>
    %116 = vector.shape_cast %115 : vector<32xf32> to vector<32x1xf32>
    %cst_44 = arith.constant 3.200000e+01 : f32
    %117 = vector.broadcast %cst_44 : f32 to vector<32x1xf32>
    %118 = arith.divf %116, %117 : vector<32x1xf32>
    %119 = vector.broadcast %111 : vector<32x1xf32> to vector<32x32xf32>
    %120 = arith.subf %105, %119 : vector<32x32xf32>
    %cst_45 = arith.constant 9.99999974E-6 : f32
    %121 = vector.broadcast %cst_45 : f32 to vector<32x1xf32>
    %122 = arith.addf %118, %121 : vector<32x1xf32>
    %123 = math.rsqrt %122 : vector<32x1xf32>
    %124 = vector.broadcast %123 : vector<32x1xf32> to vector<32x32xf32>
    %125 = arith.mulf %120, %124 : vector<32x32xf32>
    %126 = vector.broadcast %106 : vector<1x32xf32> to vector<32x32xf32>
    %127 = arith.mulf %125, %126 : vector<32x32xf32>
    %128 = vector.broadcast %107 : vector<1x32xf32> to vector<32x32xf32>
    %129 = arith.addf %127, %128 : vector<32x32xf32>
    %c0_46 = arith.constant 0 : index
    %c0_47 = arith.constant 0 : index
    %130 = vector.load %arg13[%c0_46, %c0_47] : memref<32x64xf32, #tpu.memory_space<vmem>>, vector<32x64xf32>
    %cst_48 = arith.constant dense<0.000000e+00> : vector<32x64xf32>
    %131 = tpu.matmul %129, %130, %cst_48 {dimension_numbers = #tpu.dot_dimension_numbers<[1], [0], [0], [1], [0, 0, 1, 1], [], []>} : vector<32x32xf32>, vector<32x64xf32>, vector<32x64xf32> -> vector<32x64xf32>
    %c0_49 = arith.constant 0 : index
    %c0_50 = arith.constant 0 : index
    %132 = vector.load %arg14[%c0_49, %c0_50] : memref<1x64xf32, #tpu.memory_space<vmem>>, vector<1x64xf32>
    %133 = vector.broadcast %132 : vector<1x64xf32> to vector<32x64xf32>
    %134 = arith.addf %131, %133 : vector<32x64xf32>
    %cst_51 = arith.constant 5.000000e-01 : f32
    %135 = vector.broadcast %cst_51 : f32 to vector<32x64xf32>
    %136 = arith.mulf %135, %134 : vector<32x64xf32>
    %cst_52 = arith.constant 0.707106769 : f32
    %137 = vector.broadcast %cst_52 : f32 to vector<32x64xf32>
    %138 = arith.mulf %134, %137 : vector<32x64xf32>
    %139 = math.erf %138 : vector<32x64xf32>
    %cst_53 = arith.constant 1.000000e+00 : f32
    %140 = vector.broadcast %cst_53 : f32 to vector<32x64xf32>
    %141 = arith.addf %140, %139 : vector<32x64xf32>
    %142 = arith.mulf %136, %141 : vector<32x64xf32>
    %c0_54 = arith.constant 0 : index
    %c0_55 = arith.constant 0 : index
    %143 = vector.load %arg15[%c0_54, %c0_55] : memref<64x32xf32, #tpu.memory_space<vmem>>, vector<64x32xf32>
    %cst_56 = arith.constant dense<0.000000e+00> : vector<32x32xf32>
    %144 = tpu.matmul %142, %143, %cst_56 {dimension_numbers = #tpu.dot_dimension_numbers<[1], [0], [0], [1], [0, 0, 1, 1], [], []>} : vector<32x64xf32>, vector<64x32xf32>, vector<32x32xf32> -> vector<32x32xf32>
    %c0_57 = arith.constant 0 : index
    %c0_58 = arith.constant 0 : index
    %145 = vector.load %arg16[%c0_57, %c0_58] : memref<1x32xf32, #tpu.memory_space<vmem>>, vector<1x32xf32>
    %146 = vector.broadcast %145 : vector<1x32xf32> to vector<32x32xf32>
    %147 = arith.addf %144, %146 : vector<32x32xf32>
    %148 = arith.addf %105, %147 : vector<32x32xf32>
    %c0_59 = arith.constant 0 : index
    %c0_60 = arith.constant 0 : index
    %149 = vector.load %arg17[%c0_59, %c0_60] : memref<32x32xf32, #tpu.memory_space<vmem>>, vector<32x32xf32>
    tpu.vector_store %arg17[%c0_59, %c0_60], %148 {strides = array<i32>} : memref<32x32xf32, #tpu.memory_space<vmem>>, vector<32x32xf32>,
    return
  }
}

</mosaic_0001>

<bundles_post_ra>
// kernel: tpu_custom_call.1
= control target key start
LH: loop header
LB: loop body
LE: loop exit
PB: predicated region body
PF: predicated region fallthrough
CT: control target
= control target key end

     0   :  { %s3488_s0 = inlined_call_operand.hbm [shape: f32[32,32], index: 0, kind: input, shape index: {}]   ;;  %s3489_s1 = inlined_call_operand.vmem [shape: f32[8,16,16], index: 1, kind: input, shape index: {}]   ;;  %s3490_s2 = inlined_call_operand.vmem [shape: f32[1,32], index: 2, kind: input, shape index: {}]   ;;  %s3491_s3 = inlined_call_operand.vmem [shape: f32[1,32], index: 3, kind: input, shape index: {}]   ;;  %s3492_s4 = inlined_call_operand.hbm [shape: f32[32,96], index: 4, kind: input, shape index: {}]   ;;  %s3493_s5 = inlined_call_operand.vmem [shape: f32[1,96], index: 5, kind: input, shape index: {}]   ;;  %s3494_s6 = inlined_call_operand.vmem [shape: f32[32,8], index: 6, kind: input, shape index: {}]   ;;  %s3495_s7 = inlined_call_operand.vmem [shape: f32[1,8], index: 7, kind: input, shape index: {}]   ;;  %s3496_s8 = inlined_call_operand.vmem [shape: f32[1,4], index: 8, kind: input, shape index: {}]   ;;  %s3497_s9 = inlined_call_operand.hbm [shape: f32[32,32], index: 9, kind: input, shape index: {}]   ;;  %s3498_s10 = inlined_call_operand.vmem [shape: f32[1,32], index: 10, kind: input, shape index: {}]   ;;  %s3499_s11 = inlined_call_operand.vmem [shape: f32[1,32], index: 11, kind: input, shape index: {}]   ;;  %s3500_s12 = inlined_call_operand.vmem [shape: f32[1,32], index: 12, kind: input, shape index: {}]   ;;  %s3501_s13 = inlined_call_operand.hbm [shape: f32[32,64], index: 13, kind: input, shape index: {}]   ;;  %s3502_s14 = inlined_call_operand.vmem [shape: f32[1,64], index: 14, kind: input, shape index: {}]   ;;  %s3503_s15 = inlined_call_operand.vmem [shape: f32[64,32], index: 15, kind: input, shape index: {}]   ;;  %s3504_s16 = inlined_call_operand.vmem [shape: f32[1,32], index: 16, kind: input, shape index: {}]   ;;  %s3505_s17 = inlined_call_operand.hbm [shape: f32[32,32], index: 17, kind: output, shape index: {}]  }
   0x1   :  { %3507 = sst [smem:[#allocation15_spill]] %s3488_s0 }
   0x2   :  { %3508 = sst [smem:[#allocation16_spill]] %s3489_s1 }
   0x3   :  { %22 = vsyncpa [#allocation3], 0 }
   0x4   :  { %23 = vsyncpa [#allocation6], 0 }
   0x5   :  { %24 = vsyncpa [#allocation9], 0 }
   0x6   :  { %25 = vsyncpa [#allocation4], 0  ;;  %s49_s26 = sshll.u32 %s3492_s4, 4  ;;  %s2490_s27 = smov [#allocation5]   ;;  %s50_s26 = int_to_ptr.hbm [resolvable:$true] %s49_s26 }
   0x7   :  { %s51_s28 = sshll.u32 %s2490_s27, 4  ;;  %s3509_s30 = sld [smem:[#allocation15_spill]]  ;;  %s52_s28 = int_to_ptr.vmem [resolvable:$true] %s51_s28 }
   0x8   :  { %s2491_s19 = smov 128   ;;  %s2492_s1 = smov 8  }
   0x9   :  { %57 = dma.hbm_to_vmem [thread:$0]  %s50_s26, 512, %s52_s28, [#allocation6], %s2491_s19, %s2491_s19, %s2492_s1  }
   0xa   :  { %s2493_s20 = smov [#allocation2]   ;;  %s70_s4 = sshll.u32 %s3497_s9, 4  ;;  %s71_s4 = int_to_ptr.hbm [resolvable:$true] %s70_s4 }
   0xb   :  { %s32_s21 = sshll.u32 %s2493_s20, 4  ;;  %s89_s27 = sshll.u32 %s3501_s13, 4  ;;  %s33_s21 = int_to_ptr.vmem [resolvable:$true] %s32_s21  ;;  %s90_s27 = int_to_ptr.hbm [resolvable:$true] %s89_s27 }
   0xc   :  { %s2494_s29 = smov [#allocation7]   ;;  %s2495_s26 = smov [#allocation8]  }
   0xd   :  { %s30_s18 = sshll.u32 %s3509_s30, 4  ;;  %s72_s0 = sshll.u32 %s2494_s29, 4  ;;  %s31_s18 = int_to_ptr.hbm [resolvable:$true] %s30_s18  ;;  %s73_s0 = int_to_ptr.vmem [resolvable:$true] %s72_s0 }
   0xe   :  { %38 = dma.hbm_to_vmem [thread:$0]  %s31_s18, 512, %s33_s21, [#allocation3], %s2491_s19, %s2491_s19, %s2492_s1  }
   0xf   :  { %78 = dma.hbm_to_vmem [thread:$0]  %s71_s4, 512, %s73_s0, [#allocation6], %s2491_s19, %s2491_s19, %s2492_s1  }
  0x10   :  { %s91_s9 = sshll.u32 %s2495_s26, 4  ;;  %s92_s9 = int_to_ptr.vmem [resolvable:$true] %s91_s9 }
  0x11   :  { %97 = dma.hbm_to_vmem [thread:$0]  %s90_s27, 512, %s92_s9, [#allocation9], %s2491_s19, %s2491_s19, %s2492_s1  }
  0x12   :  { %2482 = dma.done.wait [#allocation3], 512  }
  0x13   :  { %2483 = vsyncadd [#allocation3], 4294966784 }
  0x14   :  { %2484 = dma.done.wait [#allocation6], 1024  }
  0x15   :  { %2485 = vsyncadd [#allocation6], 4294966272 }
  0x16   :  { %2486 = dma.done.wait [#allocation9], 512  }
  0x17   :  { %2487 = vsyncadd [#allocation9], 4294966784  ;;  %vm126_vm0 = vcmask 261120   ;;  %v122_v0 = vld [vmem:[#allocation2 + $0x10] sm:$0xff]  ;;  %v120_v1 = vld [vmem:[#allocation2] sm:$0xff]  ;;  %v2496_v8 = vmov 32.0  }
  0x18   :  { %v133_v2 = vsel %vm126_vm0, %v122_v0, 0.0  ;;  %v127_v3 = vsel %vm126_vm0, %v120_v1, 0.0  ;;  %v123_v4 = vld [vmem:[#allocation2 + $0x18] sm:$0xff]  ;;  %v121_v5 = vld [vmem:[#allocation2 + $0x8] sm:$0xff]  ;;  %2252 = vrcp.f32 %v2496_v8  ;;  %v238_v36 = vld [vmem:[#allocation5 + $0x10] sm:$0xff]  ;;  %s2498_s0 = smov 96  }
  0x19   :  { %134 = vadd.xlane.f32.xlu1 %v133_v2  ;;  %128 = vadd.xlane.f32.xlu0 %v127_v3  ;;  %v136_v6 = vsel %vm126_vm0, %v123_v4, 0.0  ;;  %v130_v7 = vsel %vm126_vm0, %v121_v5, 0.0  ;;  %v239_v35 = vld [vmem:[#allocation5 + $0x18] sm:$0xff]  ;;  %v237_v37 = vld [vmem:[#allocation5 + $0x8] sm:$0xff]  ;;  %v236_v38 = vld [vmem:[#allocation5] sm:$0xff]  ;;  %s2499_s26 = smov 120  }
  0x1a   :  { %268 = vmatpush.msra.mxu0 %v239_v35  ;;  %v292_v39 = vld [vmem:[%s3494_s6 + $0x18] sm:$0xff]  ;;  %v291_v40 = vld [vmem:[%s3494_s6 + $0x10] sm:$0xff]  ;;  %v290_v43 = vld [vmem:[%s3494_s6 + $0x8] sm:$0xff]  ;;  %s2500_s9 = smov 112   ;;  %s2504_s30 = smov 127  }
  0x1b   :  { %2172 = vmatpush.msra.mxu1 %v292_v39  ;;  %v289_v46 = vld [vmem:[%s3494_s6] sm:$0xff]  ;;  %s2505_s18 = smov 125   ;;  %s2506_s20 = smov 126  }
  0x1c   :  { %269 = vmatpush.msra.mxu0 %v238_v36  ;;  %s3510_s23 = sld [smem:[#allocation16_spill]]  ;;  %s2507_s25 = smov 64  }
  0x1d   :  { %2173 = vmatpush.msra.mxu1 %v291_v40 }
  0x1e   :  { %v2253_v9 = vpop.eup %2252  ;;  %270 = vmatpush.msra.mxu0 %v237_v37 }
  0x1f   :  { %v140_v10 = vmul.f32 32.0, %v2253_v9  ;;  %vm144_vm1 = vweird.f32 %v2253_v9  ;;  %2174 = vmatpush.msra.mxu1 %v290_v43 }
  0x20   :  { %271 = vmatpush.msra.mxu0 %v236_v38 }
  0x21   :  { %137 = vadd.xlane.f32.xlu1 %v136_v6  ;;  %131 = vadd.xlane.f32.xlu0 %v130_v7  ;;  %v141_v11 = vsub.f32 1.0, %v140_v10 }
  0x22   :  { %309 = vmatpush.msrb.mxu0 %v292_v39  ;;  %2175 = vmatpush.msra.mxu1 %v289_v46 }
  0x23   :  { %v142_v12 = vmul.f32 %v2253_v9, %v141_v11 }
  0x24   :  { %310 = vmatpush.msrb.mxu0 %v291_v40 }
  0x25   :  { %v143_v13 = vadd.f32 %v2253_v9, %v142_v12 }
  0x26   :  { %311 = vmatpush.msrb.mxu0 %v290_v43 }
  0x27   :  { %v2629_v14 = vsel %vm144_vm1, %v2253_v9, %v143_v13  ;;  %v2243_v9 = vld [vmem:[%s3491_s3] ss:$0 sm:$0xff]  ;;  %s2497_s3 = smov 4  }
  0x28   :  { %312 = vmatpush.msrb.mxu0 %v289_v46 }
  0x8c   :  { %v135_v15 = vpop.xlane.xlu1 %134  ;;  %v129_v16 = vpop.xlane.xlu0 %128 }
  0x8d   :  { %v148_v17 = vmul.f32 %v2629_v14, %v135_v15  ;;  %v146_v18 = vmul.f32 %v2629_v14, %v129_v16 }
  0x8f   :  { %v2633_v19 = vsub.f32 %v122_v0, %v148_v17  ;;  %v2635_v20 = vsub.f32 %v120_v1, %v146_v18 }
  0x91   :  { %v156_v21 = vmul.f32 %v2633_v19, %v2633_v19  ;;  %v154_v22 = vmul.f32 %v2635_v20, %v2635_v20 }
  0x93   :  { %v164_v23 = vsel %vm126_vm0, %v156_v21, 0.0  ;;  %v158_v24 = vsel %vm126_vm0, %v154_v22, 0.0 }
  0x94   :  { %v138_v25 = vpop.xlane.xlu1 %137  ;;  %165 = vadd.xlane.f32.xlu0 %v164_v23  ;;  %159 = vadd.xlane.f32.xlu2 %v158_v24  ;;  %v132_v26 = vpop.xlane.xlu0 %131 }
  0x95   :  { %v149_v27 = vmul.f32 %v2629_v14, %v138_v25  ;;  %v147_v28 = vmul.f32 %v2629_v14, %v132_v26 }
  0x97   :  { %v2645_v29 = vsub.f32 %v123_v4, %v149_v27  ;;  %v2647_v30 = vsub.f32 %v121_v5, %v147_v28  ;;  %v2242_v5 = vld [vmem:[%s3490_s2] ss:$0 sm:$0xff] }
  0x99   :  { %v157_v31 = vmul.f32 %v2645_v29, %v2645_v29  ;;  %v155_v32 = vmul.f32 %v2647_v30, %v2647_v30 }
  0x9b   :  { %v167_v33 = vsel %vm126_vm0, %v157_v31, 0.0  ;;  %v161_v34 = vsel %vm126_vm0, %v155_v32, 0.0 }
  0x9c   :  { %168 = vadd.xlane.f32.xlu1 %v167_v33  ;;  %162 = vadd.xlane.f32.xlu2 %v161_v34 }
 0x107   :  { %v160_v41 = vpop.xlane.xlu2 %159  ;;  %v166_v42 = vpop.xlane.xlu0 %165 }
 0x108   :  { %v170_v44 = vmul.f32 %v160_v41, %v2629_v14  ;;  %v172_v45 = vmul.f32 %v166_v42, %v2629_v14 }
 0x10a   :  { %v174_v47 = vadd.f32 1e-05, %v170_v44  ;;  %v176_v48 = vadd.f32 1e-05, %v172_v45 }
 0x10c   :  { %2254 = vrsqrt.f32 %v174_v47  ;;  %vm184_vm3 = vweird.f32 %v174_v47  ;;  %vm204_vm7 = vweird.f32 %v176_v48 }
 0x10d   :  { %2256 = vrsqrt.f32 %v176_v48 }
 0x10f   :  { %v169_v49 = vpop.xlane.xlu1 %168  ;;  %v163_v50 = vpop.xlane.xlu2 %162 }
 0x110   :  { %v173_v51 = vmul.f32 %v169_v49, %v2629_v14  ;;  %v171_v52 = vmul.f32 %v163_v50, %v2629_v14 }
 0x112   :  { %v2255_v53 = vpop.eup %2254  ;;  %v177_v54 = vadd.f32 1e-05, %v173_v51  ;;  %v175_v55 = vadd.f32 1e-05, %v171_v52 }
 0x113   :  { %v2257_v56 = vpop.eup %2256  ;;  %v179_v57 = vmul.f32 %v2255_v53, %v174_v47  ;;  %vm185_vm2 = vweird.f32 %v2255_v53 }
 0x114   :  { %v199_v58 = vmul.f32 %v2257_v56, %v176_v48  ;;  %2258 = vrsqrt.f32 %v177_v54  ;;  %vm186_vm4 = vmor %vm184_vm3, %vm185_vm2  ;;  %vm194_vm5 = vweird.f32 %v175_v55  ;;  %vm205_vm8 = vweird.f32 %v2257_v56 }
 0x115   :  { %v180_v59 = vmul.f32 %v2255_v53, %v179_v57  ;;  %2260 = vrsqrt.f32 %v175_v55  ;;  %vm206_vm10 = vmor %vm204_vm7, %vm205_vm8  ;;  %vm214_vm11 = vweird.f32 %v177_v54 }
 0x116   :  { %v200_v61 = vmul.f32 %v2257_v56, %v199_v58 }
 0x117   :  { %v181_v60 = vmul.f32 0.5, %v180_v59 }
 0x118   :  { %v201_v2 = vmul.f32 0.5, %v200_v61 }
 0x119   :  { %v182_v62 = vsub.f32 1.5, %v181_v60 }
 0x11a   :  { %v2259_v63 = vpop.eup %2258  ;;  %v202_v10 = vsub.f32 1.5, %v201_v2 }
 0x11b   :  { %v2261_v0 = vpop.eup %2260  ;;  %v183_v1 = vmul.f32 %v2255_v53, %v182_v62  ;;  %v209_v3 = vmul.f32 %v2259_v63, %v177_v54  ;;  %vm215_vm12 = vweird.f32 %v2259_v63 }
 0x11c   :  { %v189_v4 = vmul.f32 %v2261_v0, %v175_v55  ;;  %vm195_vm6 = vweird.f32 %v2261_v0  ;;  %v203_v17 = vmul.f32 %v2257_v56, %v202_v10  ;;  %vm216_vm13 = vmor %vm214_vm11, %vm215_vm12 }
 0x11d   :  { %v187_v6 = vsel %vm186_vm4, %v2255_v53, %v183_v1  ;;  %v210_v11 = vmul.f32 %v2259_v63, %v209_v3  ;;  %vm196_vm9 = vmor %vm194_vm5, %vm195_vm6 }
 0x11e   :  { %v190_v7 = vmul.f32 %v2261_v0, %v189_v4  ;;  %v218_v8 = vmul.f32 %v187_v6, %v2635_v20  ;;  %v2244_v20 = vld [vmem:[%s3496_s8] ss:$0 sm:$0xff]  ;;  %v207_v24 = vsel %vm206_vm10, %v2257_v56, %v203_v17 }
 0x11f   :  { %v211_v18 = vmul.f32 0.5, %v210_v11  ;;  %405 = vrot.lane.b32.xlu0 %v2244_v20, %s2497_s3  ;;  %v220_v28 = vmul.f32 %v207_v24, %v2633_v19  ;;  %v2245_v19 = vld [vmem:[%s3493_s5] ss:$0 sm:$0xff]  ;;  %s2501_s5 = smov 104  }
 0x120   :  { %v191_v12 = vmul.f32 0.5, %v190_v7  ;;  %v225_v13 = vmul.f32 %v2242_v5, %v218_v8 }
 0x121   :  { %v212_v25 = vsub.f32 1.5, %v211_v18  ;;  %v227_v32 = vmul.f32 %v2242_v5, %v220_v28 }
 0x122   :  { %v192_v15 = vsub.f32 1.5, %v191_v12  ;;  %v232_v16 = vadd.f32 %v2243_v9, %v225_v13 }
 0x123   :  { %v213_v31 = vmul.f32 %v2259_v63, %v212_v25  ;;  %v234_v34 = vadd.f32 %v2243_v9, %v227_v32 }
 0x124   :  { %v193_v21 = vmul.f32 %v2261_v0, %v192_v15  ;;  %2092 = vmatmul.msk.f32.vlgmr.msra.gmra.mxu0 %vm126_vm0, %v232_v16 }
 0x125   :  { %v217_v33 = vsel %vm216_vm13, %v2259_v63, %v213_v31 }
 0x126   :  { %v197_v22 = vsel %vm196_vm9, %v2261_v0, %v193_v21 }
 0x127   :  { %v219_v23 = vmul.f32 %v197_v22, %v2647_v30  ;;  %v221_v30 = vmul.f32 %v217_v33, %v2645_v29  ;;  %v2246_v29 = vld [vmem:[%s3495_s7] ss:$0 sm:$0xff]  ;;  %s2502_s7 = smov 124  }
 0x129   :  { %v226_v26 = vmul.f32 %v2242_v5, %v219_v23  ;;  %v228_v35 = vmul.f32 %v2242_v5, %v221_v30 }
 0x12b   :  { %v233_v27 = vadd.f32 %v2243_v9, %v226_v26  ;;  %v235_v36 = vadd.f32 %v2243_v9, %v228_v35 }
 0x12d   :  { %2093 = vmatmul.msk.f32.gmra.mxu0 %vm126_vm0, %v233_v27  ;;  %2097 = vmatmul.msk.f32.vlgmr.msra.gmra.mxu1 %vm126_vm0, %v233_v27 }
 0x135   :  { %2094 = vmatmul.msk.f32.gmra.mxu0 %vm126_vm0, %v234_v34  ;;  %2098 = vmatmul.msk.f32.gmra.mxu1 %vm126_vm0, %v234_v34 }
 0x13d   :  { %2095 = vmatmul.msk.f32.gmra.mxu0 %vm126_vm0, %v235_v36  ;;  %2099 = vmatmul.msk.f32.gmra.mxu1 %vm126_vm0, %v235_v36 }
 0x145   :  { %2096 = vmatmul.msk.f32.vlgmr.msrb.gmra.mxu0 %vm126_vm0, %v232_v16 }
 0x191   :  { %v406_v23 = vpop.permute.xlu0 %405 }
 0x1a1   :  { %v273_v37 = vpop.f32.mrf.mxu0 }
 0x1a2   :  { %v2695_v38 = vadd.f32 %v2245_v19, %v273_v37 }
 0x1a4   :  { %620 = vrot.lane.b32.xlu0 %v2695_v38, %s2498_s0  ;;  %472 = vrot.lane.b32.xlu1 %v2695_v38, %s2499_s26  ;;  %v2707_v41 = vmul.f32 0.35355338, %v2695_v38 }
 0x1a5   :  { %480 = vrot.lane.b32.xlu2 %v2695_v38, %s2500_s9 }
 0x1aa   :  { %v276_v39 = vpop.f32.mrf.mxu0  ;;  %v317_v40 = vpop.f32.mrf.mxu1 }
 0x1ab   :  { %v2709_v42 = vadd.f32 %v2245_v19, %v276_v39  ;;  %v318_v43 = vadd.f32 %v2246_v29, %v317_v40 }
 0x1ac   :  { %488 = vrot.lane.b32.xlu1 %v2695_v38, %s2501_s5  ;;  %444 = vrot.lane.b32.xlu0 %v2707_v41, %s2499_s26 }
 0x1ad   :  { %452 = vrot.lane.b32.xlu2 %v2707_v41, %s2500_s9  ;;  %v2207_v44 = vpack.i.bf16 %v2695_v38, %v2709_v42  ;;  %v2101_v45 = vmul.f32 -1.442695, %v318_v43  ;;  %v2726_v52 = vmul.f32 0.35355338, %v2709_v42 }
 0x1af   :  { %2262 = vpow2.f32 %v2101_v45 }
 0x1b2   :  { %v279_v46 = vpop.f32.mrf.mxu0  ;;  %v320_v47 = vpop.f32.mrf.mxu1 }
 0x1b3   :  { %v321_v48 = vadd.f32 %v2246_v29, %v320_v47  ;;  %v2734_v56 = vadd.f32 %v2245_v19, %v279_v46 }
 0x1b4   :  { %460 = vrot.lane.b32.xlu1 %v2707_v41, %s2501_s5  ;;  %622 = vrot.lane.b32.xlu0 %v2709_v42, %s2498_s0 }
 0x1b5   :  { %v2102_v49 = vmul.f32 -1.442695, %v321_v48  ;;  %474 = vrot.lane.b32.xlu2 %v2709_v42, %s2499_s26  ;;  %v2263_v50 = vpop.eup %2262  ;;  %v2748_v2 = vmul.f32 0.35355338, %v2734_v56 }
 0x1b6   :  { %v339_v53 = vadd.f32 1.0, %v2263_v50 }
 0x1b7   :  { %2264 = vpow2.f32 %v2102_v49 }
 0x1b8   :  { %2266 = vrcp.f32 %v339_v53  ;;  %v368_v13 = vand.u32 2147483648, %v339_v53  ;;  %vm362_vm15 = vweird.f32 %v339_v53  ;;  %v366_v16 = vand.u32 2147483647, %v339_v53 }
 0x1ba   :  { %v282_v51 = vpop.f32.mrf.mxu0  ;;  %v323_v55 = vpop.f32.mrf.mxu1  ;;  %v369_v20 = vor.u32 1.1754944e-38, %v368_v13  ;;  %vm367_vm2 = vcmp.eq.f32.partialorder %v366_v16, 8.507059e+37 }
 0x1bb   :  { %v324_v59 = vadd.f32 %v2246_v29, %v323_v55  ;;  %v2745_v1 = vadd.f32 %v2245_v19, %v282_v51 }
 0x1bc   :  { %490 = vrot.lane.b32.xlu1 %v2709_v42, %s2501_s5  ;;  %454 = vrot.lane.b32.xlu0 %v2726_v52, %s2500_s9 }
 0x1bd   :  { %482 = vrot.lane.b32.xlu2 %v2709_v42, %s2500_s9  ;;  %v2265_v54 = vpop.eup %2264  ;;  %v2103_v63 = vmul.f32 -1.442695, %v324_v59  ;;  %v2767_v22 = vmul.f32 0.35355338, %v2745_v1 }
 0x1be   :  { %v2736_v57 = vadd.f32 1.0, %v2265_v54  ;;  %v2267_v61 = vpop.eup %2266 }
 0x1bf   :  { %v358_v0 = vmul.f32 %v2267_v61, %v339_v53  ;;  %vm363_vm14 = vweird.f32 %v2267_v61 }
 0x1c0   :  { %2268 = vrcp.f32 %v2736_v57  ;;  %vm364_vm1 = vmor %vm362_vm15, %vm363_vm14  ;;  %v383_v27 = vand.u32 2147483648, %v2736_v57  ;;  %vm377_vm4 = vweird.f32 %v2736_v57  ;;  %v381_v32 = vand.u32 2147483647, %v2736_v57 }
 0x1c1   :  { %v359_v4 = vsub.f32 1.0, %v358_v0  ;;  %vm624_vm15 = vcmask 64512  }
 0x1c2   :  { %v314_v58 = vpop.f32.mrf.mxu0  ;;  %v384_v35 = vor.u32 1.1754944e-38, %v383_v27  ;;  %vm382_vm6 = vcmp.eq.f32.partialorder %v381_v32, 8.507059e+37 }
 0x1c3   :  { %v315_v60 = vadd.f32 %v2246_v29, %v314_v58  ;;  %v360_v8 = vmul.f32 %v2267_v61, %v359_v4 }
 0x1c4   :  { %484 = vrot.lane.b32.xlu1 %v2734_v56, %s2500_s9  ;;  %492 = vrot.lane.b32.xlu0 %v2734_v56, %s2501_s5 }
 0x1c5   :  { %v2100_v62 = vmul.f32 -1.442695, %v315_v60  ;;  %446 = vrot.lane.b32.xlu2 %v2726_v52, %s2499_s26  ;;  %v361_v11 = vadd.f32 %v2267_v61, %v360_v8 }
 0x1c6   :  { %v2269_v3 = vpop.eup %2268 }
 0x1c7   :  { %2270 = vpow2.f32 %v2100_v62  ;;  %v373_v7 = vmul.f32 %v2269_v3, %v2736_v57  ;;  %v365_v18 = vsel %vm364_vm1, %v2267_v61, %v361_v11  ;;  %vm378_vm3 = vweird.f32 %v2269_v3 }
 0x1c8   :  { %2272 = vpow2.f32 %v2103_v63  ;;  %v2769_v24 = vsel %vm367_vm2, %v369_v20, %v365_v18  ;;  %vm379_vm5 = vmor %vm377_vm4, %vm378_vm3  ;;  %vm901_vm1 = vcmask 130048  }
 0x1c9   :  { %v374_v12 = vsub.f32 1.0, %v373_v7  ;;  %v409_v31 = vmul.f32 %v406_v23, %v2769_v24 }
 0x1cb   :  { %v375_v21 = vmul.f32 %v2269_v3, %v374_v12  ;;  %v2105_v36 = vadd.f32 -1.0, %v409_v31 }
 0x1cc   :  { %478 = vrot.lane.b32.xlu0 %v2745_v1, %s2499_s26  ;;  %456 = vrot.lane.b32.xlu1 %v2748_v2, %s2500_s9 }
 0x1cd   :  { %v2271_v5 = vpop.eup %2270  ;;  %462 = vrot.lane.b32.xlu2 %v2726_v52, %s2501_s5  ;;  %v376_v25 = vadd.f32 %v2269_v3, %v375_v21 }
 0x1ce   :  { %v338_v6 = vadd.f32 1.0, %v2271_v5  ;;  %v2273_v9 = vpop.eup %2272 }
 0x1cf   :  { %v2757_v10 = vadd.f32 1.0, %v2273_v9  ;;  %v380_v33 = vsel %vm379_vm5, %v2269_v3, %v376_v25 }
 0x1d0   :  { %2274 = vrcp.f32 %v338_v6  ;;  %v2782_v19 = vsel %vm382_vm6, %v384_v35, %v380_v33  ;;  %v353_v29 = vand.u32 2147483648, %v338_v6  ;;  %vm347_vm8 = vweird.f32 %v338_v6 }
 0x1d1   :  { %2276 = vrcp.f32 %v2757_v10  ;;  %v410_v40 = vmul.f32 %v406_v23, %v2782_v19  ;;  %v351_v43 = vand.u32 2147483647, %v338_v6  ;;  %v398_v53 = vand.u32 2147483648, %v2757_v10 }
 0x1d2   :  { %v354_v46 = vor.u32 1.1754944e-38, %v353_v29  ;;  %vm392_vm12 = vweird.f32 %v2757_v10  ;;  %v396_v54 = vand.u32 2147483647, %v2757_v10 }
 0x1d3   :  { %v2106_v48 = vadd.f32 -1.0, %v410_v40  ;;  %vm352_vm10 = vcmp.eq.f32.partialorder %v351_v43, 8.507059e+37  ;;  %v399_v58 = vor.u32 1.1754944e-38, %v398_v53 }
 0x1d4   :  { %658 = vrot.lane.b32.xlu0 %v2745_v1, %s2498_s0  ;;  %494 = vrot.lane.b32.xlu1 %v2745_v1, %s2501_s5  ;;  %vm397_vm14 = vcmp.eq.f32.partialorder %v396_v54, 8.507059e+37 }
 0x1d5   :  { %476 = vrot.lane.b32.xlu2 %v2734_v56, %s2499_s26 }
 0x1d6   :  { %v2275_v15 = vpop.eup %2274 }
 0x1d7   :  { %v343_v17 = vmul.f32 %v2275_v15, %v338_v6  ;;  %v2277_v28 = vpop.eup %2276  ;;  %vm348_vm7 = vweird.f32 %v2275_v15 }
 0x1d8   :  { %v388_v30 = vmul.f32 %v2277_v28, %v2757_v10  ;;  %vm349_vm9 = vmor %vm347_vm8, %vm348_vm7  ;;  %vm393_vm11 = vweird.f32 %v2277_v28 }
 0x1d9   :  { %v344_v26 = vsub.f32 1.0, %v343_v17  ;;  %vm394_vm13 = vmor %vm392_vm12, %vm393_vm11 }
 0x1da   :  { %v389_v39 = vsub.f32 1.0, %v388_v30 }
 0x1db   :  { %v345_v34 = vmul.f32 %v2275_v15, %v344_v26 }
 0x1dc   :  { %486 = vrot.lane.b32.xlu0 %v2745_v1, %s2500_s9  ;;  %450 = vrot.lane.b32.xlu1 %v2767_v22, %s2499_s26  ;;  %v390_v47 = vmul.f32 %v2277_v28, %v389_v39 }
 0x1dd   :  { %656 = vrot.lane.b32.xlu2 %v2734_v56, %s2498_s0  ;;  %v346_v37 = vadd.f32 %v2275_v15, %v345_v34 }
 0x1de   :  { %v391_v50 = vadd.f32 %v2277_v28, %v390_v47 }
 0x1df   :  { %v350_v45 = vsel %vm349_vm9, %v2275_v15, %v346_v37 }
 0x1e0   :  { %v2790_v49 = vsel %vm352_vm10, %v354_v46, %v350_v45  ;;  %v395_v55 = vsel %vm394_vm13, %v2277_v28, %v391_v50  ;;  %v2503_v28 = vmov 0  }
 0x1e1   :  { %v408_v51 = vmul.f32 %v406_v23, %v2790_v49  ;;  %v2800_v59 = vsel %vm397_vm14, %v399_v58, %v395_v55  ;;  %2199 = vset.pattern.permute.xlu0 %v2503_v28  ;;  %2201 = vset.pattern.permute.xlu1 %v2503_v28 }
 0x1e2   :  { %v411_v60 = vmul.f32 %v406_v23, %v2800_v59  ;;  %2200 = vset.pattern.permute.xlu2 %v2503_v28 }
 0x1e3   :  { %v2104_v57 = vadd.f32 -1.0, %v408_v51 }
 0x1e4   :  { %466 = vrot.lane.b32.xlu0 %v2767_v22, %s2501_s5  ;;  %422 = vrot.lane.b32.xlu1 %v2105_v36, %s2502_s7  ;;  %v2107_v61 = vadd.f32 -1.0, %v411_v60 }
 0x1e5   :  { %448 = vrot.lane.b32.xlu2 %v2748_v2, %s2499_s26  ;;  %s2509_s26 = smov 16  }
 0x1ec   :  { %424 = vrot.lane.b32.xlu0 %v2106_v48, %s2502_s7 }
 0x1ed   :  { %464 = vrot.lane.b32.xlu2 %v2748_v2, %s2501_s5 }
 0x1f4   :  { %420 = vrot.lane.b32.xlu0 %v2104_v57, %s2502_s7 }
 0x1f5   :  { %458 = vrot.lane.b32.xlu2 %v2767_v22, %s2500_s9 }
 0x1fd   :  { %426 = vrot.lane.b32.xlu2 %v2107_v61, %s2502_s7 }
 0x1ff   :  { %v2806_v62 = vpop.permute.xlu2 %480 }
 0x200   :  { %761 = vrot.lane.b32.xlu1 %v2806_v62, %s2498_s0 }
 0x207   :  { %v2810_v63 = vpop.permute.xlu2 %452 }
 0x20f   :  { %v2812_v0 = vpop.permute.xlu2 %474 }
 0x216   :  { %v2814_v3 = vpop.permute.xlu1 %472  ;;  %v621_v4 = vpop.permute.xlu0 %620 }
 0x217   :  { %v2202_v5 = vpack.i.bf16 %v2814_v3, %v2812_v0  ;;  %v2818_v6 = vpop.permute.xlu2 %482  ;;  %691 = vrot.lane.b32.xlu2 %v2814_v3, %s2498_s0 }
 0x21e   :  { %v2822_v7 = vpop.permute.xlu1 %488  ;;  %v2824_v8 = vpop.permute.xlu0 %444 }
 0x21f   :  { %v2826_v9 = vpop.permute.xlu2 %446  ;;  %693 = vrot.lane.b32.xlu2 %v2812_v0, %s2498_s0  ;;  %831 = vrot.lane.b32.xlu0 %v2822_v7, %s2498_s0 }
 0x226   :  { %v2832_v10 = vpop.permute.xlu1 %460  ;;  %v623_v11 = vpop.permute.xlu0 %622 }
 0x227   :  { %v2834_v12 = vpop.permute.xlu2 %462  ;;  %763 = vrot.lane.b32.xlu0 %v2818_v6, %s2498_s0  ;;  %2108 = vmatpush.xpose.msk.msra.mxu2 %vm624_vm15, %v623_v11 }
 0x228   :  { %2176 = vmatpush.xpose.msk.msra.mxu3 %vm624_vm15, %v623_v11 }
 0x22b   :  { %2109 = vmatpush.xpose.msk.msra.mxu2 %vm624_vm15, %v621_v4 }
 0x22c   :  { %2177 = vmatpush.xpose.msk.msra.mxu3 %vm624_vm15, %v621_v4 }
 0x22e   :  { %v2842_v13 = vpop.permute.xlu1 %490  ;;  %2110 = vmatmul.msk.f32.vlgmr.msra.gmra.mxu2 %vm624_vm15, %v2707_v41  ;;  %v2846_v15 = vpop.permute.xlu0 %454 }
 0x22f   :  { %v2848_v16 = vpop.permute.xlu2 %476  ;;  %2111 = vmatmul.msk.f32.vlgmr.msra.gmra.mxu3 %vm624_vm15, %v2726_v52  ;;  %833 = vrot.lane.b32.xlu2 %v2842_v13, %s2498_s0 }
 0x230   :  { %v2217_v17 = vpack.i.bf16 %v2822_v7, %v2848_v16  ;;  %726 = vrot.lane.b32.xlu1 %v2848_v16, %s2498_s0 }
 0x236   :  { %v2858_v18 = vpop.permute.xlu1 %484  ;;  %v2860_v21 = vpop.permute.xlu0 %492 }
 0x237   :  { %796 = vrot.lane.b32.xlu2 %v2858_v18, %s2498_s0  ;;  %866 = vrot.lane.b32.xlu0 %v2860_v21, %s2498_s0  ;;  %v657_v23 = vpop.permute.xlu2 %656 }
 0x23e   :  { %v2866_v41 = vpop.permute.xlu1 %456  ;;  %v2868_v52 = vpop.permute.xlu0 %478 }
 0x23f   :  { %v2212_v20 = vpack.i.bf16 %v2842_v13, %v2868_v52  ;;  %728 = vrot.lane.b32.xlu1 %v2868_v52, %s2498_s0  ;;  %v2881_v31 = vpop.permute.xlu2 %448 }
 0x246   :  { %v2874_v25 = vpop.permute.xlu1 %494  ;;  %v659_v26 = vpop.permute.xlu0 %658 }
 0x247   :  { %v2232_v27 = vpack.i.bf16 %v2860_v21, %v2874_v25  ;;  %868 = vrot.lane.b32.xlu1 %v2874_v25, %s2498_s0  ;;  %2112 = vmatpush.xpose.msk.msrb.mxu3 %vm624_vm15, %v659_v26  ;;  %v2894_v30 = vpop.permute.xlu2 %464 }
 0x24b   :  { %2113 = vmatpush.xpose.msk.msrb.mxu3 %vm624_vm15, %v657_v23 }
 0x24e   :  { %v2884_v32 = vpop.permute.xlu1 %450  ;;  %2114 = vmatmul.msk.f32.vlgmr.msrb.gmra.mxu3 %vm624_vm15, %v2748_v2  ;;  %v2888_v33 = vpop.permute.xlu0 %486 }
 0x24f   :  { %v2237_v34 = vpack.i.bf16 %v2858_v18, %v2888_v33  ;;  %798 = vrot.lane.b32.xlu1 %v2888_v33, %s2498_s0  ;;  %v2901_v39 = vpop.permute.xlu2 %458 }
 0x256   :  { %v423_v35 = vpop.permute.xlu1 %422  ;;  %2115 = vmatmul.msk.f32.gmra.mxu3 %vm624_vm15, %v2767_v22  ;;  %v2898_v36 = vpop.permute.xlu0 %466 }
 0x257   :  { %v433_v37 = vmul.f32 %v423_v35, %v2769_v24  ;;  %v427_v46 = vpop.permute.xlu2 %426 }
 0x258   :  { %v435_v47 = vmul.f32 %v427_v46, %v2800_v59 }
 0x259   :  { %v437_v29 = vadd.f32 2.0, %v433_v37 }
 0x25a   :  { %v439_v50 = vadd.f32 2.0, %v435_v47 }
 0x25b   :  { %502 = vrot.lane.b32.xlu0 %v437_v29, %s2504_s30  ;;  %518 = vrot.lane.b32.xlu1 %v437_v29, %s2505_s18 }
 0x25e   :  { %v425_v2 = vpop.permute.xlu0 %424 }
 0x25f   :  { %v434_v40 = vmul.f32 %v425_v2, %v2782_v19 }
 0x261   :  { %v438_v43 = vadd.f32 2.0, %v434_v40  ;;  %v527_v40 = vld [vmem:[%s3510_s23 + $0x18] sm:$0xff] }
 0x263   :  { %510 = vrot.lane.b32.xlu0 %v437_v29, %s2506_s20  ;;  %512 = vrot.lane.b32.xlu1 %v438_v43, %s2506_s20 }
 0x264   :  { %504 = vrot.lane.b32.xlu2 %v438_v43, %s2504_s30 }
 0x266   :  { %v421_v22 = vpop.permute.xlu0 %420 }
 0x267   :  { %v432_v45 = vmul.f32 %v421_v22, %v2790_v49 }
 0x269   :  { %v436_v24 = vadd.f32 2.0, %v432_v45 }
 0x26b   :  { %545 = vperm.xlu0 %2199, %v437_v29   ;;  %500 = vrot.lane.b32.xlu1 %v436_v24, %s2504_s30 }
 0x26c   :  { %520 = vrot.lane.b32.xlu2 %v438_v43, %s2505_s18 }
 0x271   :  { %v692_v48 = vpop.permute.xlu2 %691 }
 0x272   :  { %v762_v53 = vpop.permute.xlu1 %761 }
 0x273   :  { %549 = vperm.xlu0 %2199, %v438_v43   ;;  %516 = vrot.lane.b32.xlu1 %v436_v24, %s2505_s18 }
 0x274   :  { %506 = vrot.lane.b32.xlu2 %v439_v50, %s2504_s30 }
 0x279   :  { %v694_v19 = vpop.permute.xlu2 %693 }
 0x27a   :  { %2116 = vmatpush.xpose.msk.msrb.mxu2 %vm624_vm15, %v694_v19 }
 0x27b   :  { %508 = vrot.lane.b32.xlu0 %v436_v24, %s2506_s20  ;;  %541 = vperm.xlu1 %2201, %v436_v24  }
 0x27c   :  { %522 = vrot.lane.b32.xlu2 %v439_v50, %s2505_s18 }
 0x27e   :  { %2117 = vmatpush.xpose.msk.msrb.mxu2 %vm624_vm15, %v692_v48 }
 0x281   :  { %2118 = vmatmul.msk.f32.vlgmr.msrb.gmra.mxu2 %vm624_vm15, %v2824_v8 }
 0x284   :  { %514 = vrot.lane.b32.xlu2 %v439_v50, %s2506_s20 }
 0x289   :  { %v834_v49 = vpop.permute.xlu2 %833  ;;  %2119 = vmatmul.msk.f32.gmra.mxu2 %vm624_vm15, %v2826_v9 }
 0x28a   :  { %2132 = vmatpush.xpose.msk.msra.mxu2 %vm624_vm15, %v834_v49 }
 0x28c   :  { %553 = vperm.xlu2 %2200, %v439_v50  }
 0x291   :  { %v832_v51 = vpop.permute.xlu0 %831  ;;  %v797_v57 = vpop.permute.xlu2 %796 }
 0x292   :  { %2133 = vmatpush.xpose.msk.msra.mxu2 %vm624_vm15, %v832_v51 }
 0x295   :  { %2134 = vmatmul.msk.f32.vlgmr.msra.gmra.mxu2 %vm624_vm15, %v2832_v10 }
 0x299   :  { %v764_v58 = vpop.permute.xlu0 %763 }
 0x29d   :  { %2135 = vmatmul.msk.f32.gmra.mxu2 %vm624_vm15, %v2834_v12 }
 0x2a2   :  { %v727_v54 = vpop.permute.xlu1 %726 }
 0x2a9   :  { %v867_v61 = vpop.permute.xlu0 %866 }
 0x2b1   :  { %v729_v55 = vpop.permute.xlu1 %728  ;;  %v650_v19 = vpop.f32.mrf.mxu2 }
 0x2b2   :  { %2120 = vmatpush.xpose.msk.msra.mxu3 %vm624_vm15, %v729_v55  ;;  %v653_v28 = vpop.f32.mrf.mxu3 }
 0x2b6   :  { %2121 = vmatpush.xpose.msk.msra.mxu3 %vm624_vm15, %v727_v54 }
 0x2b9   :  { %v869_v59 = vpop.permute.xlu1 %868  ;;  %2122 = vmatmul.msk.f32.vlgmr.msra.gmra.mxu3 %vm624_vm15, %v2881_v31  ;;  %v526_v31 = vld [vmem:[%s3510_s23 + $0x10] sm:$0xff] }
 0x2ba   :  { %2124 = vmatpush.xpose.msk.msrb.mxu3 %vm624_vm15, %v764_v58 }
 0x2be   :  { %2125 = vmatpush.xpose.msk.msrb.mxu3 %vm624_vm15, %v762_v53  ;;  %v505_v60 = vpop.permute.xlu2 %504  ;;  %v529_v53 = vld [vmem:[%s3510_s23 + $0x28] sm:$0xff] }
 0x2bf   :  { %565 = vperm.xlu2 %2200, %v505_v60  }
 0x2c1   :  { %2123 = vmatmul.msk.f32.gmra.mxu3 %vm624_vm15, %v2884_v32  ;;  %v799_v4 = vpop.permute.xlu1 %798 }
 0x2c2   :  { %2136 = vmatpush.xpose.msk.msra.mxu3 %vm624_vm15, %v869_v59  ;;  %2128 = vmatpush.xpose.msk.msrb.mxu1 %vm624_vm15, %v799_v4  ;;  %v524_v59 = vld [vmem:[%s3510_s23] sm:$0xff] }
 0x2c6   :  { %2137 = vmatpush.xpose.msk.msra.mxu3 %vm624_vm15, %v867_v61  ;;  %2129 = vmatpush.xpose.msk.msrb.mxu1 %vm624_vm15, %v797_v57  ;;  %v521_v10 = vpop.permute.xlu2 %520 }
 0x2c9   :  { %2126 = vmatmul.msk.f32.vlgmr.msrb.gmra.mxu3 %vm624_vm15, %v2810_v63  ;;  %2130 = vmatmul.msk.f32.vlgmr.msrb.gmra.mxu1 %vm624_vm15, %v2866_v41 }
 0x2cd   :  { %v519_v8 = vpop.permute.xlu1 %518  ;;  %v503_v9 = vpop.permute.xlu0 %502 }
 0x2ce   :  { %593 = vperm.xlu0 %2199, %v519_v8   ;;  %561 = vperm.xlu1 %2201, %v503_v9   ;;  %v507_v63 = vpop.permute.xlu2 %506 }
 0x2d1   :  { %2127 = vmatmul.msk.f32.gmra.mxu3 %vm624_vm15, %v2846_v15  ;;  %2131 = vmatmul.msk.f32.gmra.mxu1 %vm624_vm15, %v2901_v39  ;;  %v525_v15 = vld [vmem:[%s3510_s23 + $0x8] sm:$0xff]  ;;  %v685_v37 = vpop.f32.mrf.mxu3 }
 0x2d5   :  { %v513_v11 = vpop.permute.xlu1 %512  ;;  %v511_v12 = vpop.permute.xlu0 %510 }
 0x2d6   :  { %581 = vperm.xlu2 %2200, %v513_v11   ;;  %577 = vperm.xlu1 %2201, %v511_v12   ;;  %v523_v41 = vpop.permute.xlu2 %522 }
 0x2d9   :  { %2138 = vmatmul.msk.f32.vlgmr.msra.gmra.mxu3 %vm624_vm15, %v2894_v30  ;;  %v688_v45 = vpop.f32.mrf.mxu3 }
 0x2dd   :  { %v546_v23 = vpop.permute.xlu0 %545  ;;  %v501_v47 = vpop.permute.xlu1 %500 }
 0x2de   :  { %569 = vperm.xlu1 %2201, %v507_v63   ;;  %v605_v26 = vmul.f32 %v546_v23, %v525_v15  ;;  %v515_v29 = vpop.permute.xlu2 %514  ;;  %v534_v63 = vld [vmem:[%s3510_s23 + $0x50] sm:$0xff] }
 0x2e0   :  { %v2948_v30 = vadd.f32 %v653_v28, %v605_v26 }
 0x2e1   :  { %2139 = vmatmul.msk.f32.gmra.mxu3 %vm624_vm15, %v2898_v36 }
 0x2e2   :  { %v905_v36 = vsel %vm901_vm1, %v2948_v30, -inf }
 0x2e5   :  { %v550_v32 = vpop.permute.xlu0 %549  ;;  %v517_v50 = vpop.permute.xlu1 %516 }
 0x2e6   :  { %601 = vperm.xlu1 %2201, %v523_v41   ;;  %v606_v35 = vmul.f32 %v550_v32, %v526_v31  ;;  %v554_v43 = vpop.permute.xlu2 %553 }
 0x2e7   :  { %v607_v22 = vmul.f32 %v554_v43, %v527_v40 }
 0x2e8   :  { %v2952_v2 = vadd.f32 %v685_v37, %v606_v35  ;;  %v530_v37 = vld [vmem:[%s3510_s23 + $0x30] sm:$0xff] }
 0x2e9   :  { %v2959_v46 = vadd.f32 %v688_v45, %v607_v22 }
 0x2ea   :  { %v908_v39 = vsel %vm901_vm1, %v2952_v2, -inf }
 0x2eb   :  { %v911_v24 = vsel %vm901_vm1, %v2959_v46, -inf }
 0x2ed   :  { %v509_v48 = vpop.permute.xlu0 %508  ;;  %v542_v49 = vpop.permute.xlu1 %541 }
 0x2ee   :  { %v604_v9 = vmul.f32 %v542_v49, %v524_v59 }
 0x2f0   :  { %v2980_v11 = vadd.f32 %v650_v19, %v604_v9  ;;  %v532_v9 = vld [vmem:[%s3510_s23 + $0x40] sm:$0xff] }
 0x2f2   :  { %v902_v26 = vsel %vm901_vm1, %v2980_v11, -inf }
 0x2f8   :  { %906 = vmax.xlane.f32.xlu0 %v905_v36 }
 0x2ff   :  { %909 = vmax.xlane.f32.xlu2 %v908_v39 }
 0x304   :  { %v2963_v51 = vpop.f32.mrf.mxu2 }
 0x30c   :  { %597 = vperm.xlu0 %2199, %v521_v10   ;;  %v723_v57 = vpop.f32.mrf.mxu2  ;;  %v531_v10 = vld [vmem:[%s3510_s23 + $0x38] sm:$0xff] }
 0x310   :  { %912 = vmax.xlane.f32.xlu1 %v911_v24 }
 0x314   :  { %557 = vperm.xlu0 %2199, %v501_v47  }
 0x317   :  { %585 = vperm.xlu2 %2200, %v515_v29  }
 0x318   :  { %v860_v49 = vpop.f32.mrf.mxu2 }
 0x319   :  { %v566_v8 = vpop.permute.xlu2 %565 }
 0x31a   :  { %v610_v39 = vmul.f32 %v566_v8, %v530_v37 }
 0x31f   :  { %573 = vperm.xlu2 %2200, %v509_v48  }
 0x329   :  { %589 = vperm.xlu1 %2201, %v517_v50  }
 0x330   :  { %v582_v41 = vpop.permute.xlu2 %581 }
 0x331   :  { %v614_v32 = vmul.f32 %v582_v41, %v534_v63 }
 0x33c   :  { %v755_v61 = vpop.f32.mrf.mxu3 }
 0x33d   :  { %v2998_v40 = vadd.f32 %v755_v61, %v610_v39 }
 0x33f   :  { %v920_v43 = vsel %vm901_vm1, %v2998_v40, -inf }
 0x340   :  { %v562_v54 = vpop.permute.xlu1 %561  ;;  %v594_v22 = vpop.permute.xlu0 %593 }
 0x341   :  { %v609_v55 = vmul.f32 %v562_v54, %v529_v53  ;;  %v535_v53 = vld [vmem:[%s3510_s23 + $0x58] sm:$0xff] }
 0x343   :  { %v2968_v58 = vadd.f32 %v723_v57, %v609_v55 }
 0x344   :  { %v758_v15 = vpop.f32.mrf.mxu3 }
 0x345   :  { %v917_v60 = vsel %vm901_vm1, %v2968_v58, -inf }
 0x346   :  { %v825_v28 = vpop.f32.mrf.mxu1 }
 0x347   :  { %v2991_v36 = vadd.f32 %v825_v28, %v614_v32 }
 0x348   :  { %v2975_v4 = vpop.permute.xlu1 %577  ;;  %918 = vmax.xlane.f32.xlu2 %v917_v60 }
 0x349   :  { %v932_v29 = vsel %vm901_vm1, %v2991_v36, -inf }
 0x34e   :  { %v828_v57 = vpop.f32.mrf.mxu1 }
 0x350   :  { %v570_v12 = vpop.permute.xlu1 %569 }
 0x351   :  { %v611_v23 = vmul.f32 %v570_v12, %v531_v10  ;;  %v863_v10 = vpop.f32.mrf.mxu2 }
 0x353   :  { %903 = vmax.xlane.f32.xlu1 %v902_v26  ;;  %v2987_v31 = vadd.f32 %v758_v15, %v611_v23  ;;  %v790_v23 = vpop.f32.mrf.mxu3  ;;  %v528_v15 = vld [vmem:[%s3510_s23 + $0x20] sm:$0xff] }
 0x355   :  { %v923_v35 = vsel %vm901_vm1, %v2987_v31, -inf }
 0x356   :  { %924 = vmax.xlane.f32.xlu0 %v923_v35 }
 0x358   :  { %v3034_v39 = vpop.permute.xlu1 %601 }
 0x35b   :  { %933 = vmax.xlane.f32.xlu1 %v932_v29  ;;  %v793_v0 = vpop.f32.mrf.mxu3 }
 0x363   :  { %921 = vmax.xlane.f32.xlu1 %v920_v43 }
 0x36b   :  { %v907_v45 = vpop.xlane.xlu0 %906 }
 0x36c   :  { %v951_v24 = vsub.f32 %v2948_v30, %v907_v45  ;;  %v537_v30 = vld [vmem:[%s3510_s23 + $0x68] sm:$0xff] }
 0x36d   :  { %v617_v61 = vmul.f32 %v594_v22, %v537_v30 }
 0x36e   :  { %v968_v47 = vmul.f32 1.442695, %v951_v24  ;;  %v536_v24 = vld [vmem:[%s3510_s23 + $0x60] sm:$0xff] }
 0x36f   :  { %v3020_v41 = vadd.f32 %v863_v10, %v617_v61 }
 0x370   :  { %2278 = vpow2.f32 %v968_v47 }
 0x371   :  { %v941_v35 = vsel %vm901_vm1, %v3020_v41, -inf }
 0x372   :  { %v910_v48 = vpop.xlane.xlu2 %909 }
 0x373   :  { %v952_v45 = vsub.f32 %v2952_v2, %v910_v48 }
 0x375   :  { %v970_v47 = vmul.f32 1.442695, %v952_v45 }
 0x376   :  { %v3003_v50 = vpop.eup %2278 }
 0x377   :  { %v1001_v19 = vsel %vm901_vm1, %v3003_v50, 0.0  ;;  %2280 = vpow2.f32 %v970_v47 }
 0x378   :  { %1002 = vadd.xlane.f32.xlu1 %v1001_v19 }
 0x37a   :  { %v586_v54 = vpop.permute.xlu2 %585 }
 0x37b   :  { %v615_v55 = vmul.f32 %v586_v54, %v535_v53 }
 0x37d   :  { %v3013_v59 = vadd.f32 %v828_v57, %v615_v55  ;;  %v3054_v2 = vpop.eup %2280 }
 0x37e   :  { %v598_v60 = vpop.permute.xlu0 %597  ;;  %v1004_v13 = vsel %vm901_vm1, %v3054_v2, 0.0 }
 0x37f   :  { %v935_v8 = vsel %vm901_vm1, %v3013_v59, -inf }
 0x380   :  { %936 = vmax.xlane.f32.xlu2 %v935_v8 }
 0x382   :  { %v574_v12 = vpop.permute.xlu2 %573 }
 0x383   :  { %v612_v63 = vmul.f32 %v574_v12, %v532_v9  ;;  %v913_v22 = vpop.xlane.xlu1 %912  ;;  %v533_v12 = vld [vmem:[%s3510_s23 + $0x48] sm:$0xff] }
 0x384   :  { %v953_v52 = vsub.f32 %v2959_v46, %v913_v22 }
 0x385   :  { %v3025_v26 = vadd.f32 %v790_v23, %v612_v63  ;;  %v613_v23 = vmul.f32 %v2975_v4, %v533_v12 }
 0x386   :  { %v558_v28 = vpop.permute.xlu0 %557 }
 0x387   :  { %v608_v32 = vmul.f32 %v558_v28, %v528_v15  ;;  %v926_v37 = vsel %vm901_vm1, %v3025_v26, -inf }
 0x388   :  { %942 = vmax.xlane.f32.xlu2 %v941_v35  ;;  %927 = vmax.xlane.f32.xlu1 %v926_v37 }
 0x389   :  { %v3032_v29 = vadd.f32 %v2963_v51, %v608_v32  ;;  %v3098_v32 = vadd.f32 %v793_v0, %v613_v23 }
 0x38b   :  { %v914_v43 = vsel %vm901_vm1, %v3032_v29, -inf  ;;  %v929_v35 = vsel %vm901_vm1, %v3098_v32, -inf }
 0x38c   :  { %915 = vmax.xlane.f32.xlu0 %v914_v43 }
 0x39b   :  { %v590_v19 = vpop.permute.xlu1 %589 }
 0x39c   :  { %v616_v53 = vmul.f32 %v590_v19, %v536_v24 }
 0x39e   :  { %v3042_v54 = vadd.f32 %v860_v49, %v616_v53  ;;  %v895_v49 = vpop.f32.mrf.mxu3 }
 0x3a0   :  { %2213 = vrot.lane.b32.xlu2 %v2212_v20, %s2507_s25  ;;  %v938_v51 = vsel %vm901_vm1, %v3042_v54, -inf  ;;  %v972_v20 = vmul.f32 1.442695, %v953_v52 }
 0x3a1   :  { %2203 = vrot.lane.b32.xlu1 %v2202_v5, %s2507_s25  ;;  %939 = vmax.xlane.f32.xlu0 %v938_v51  ;;  %v538_v5 = vld [vmem:[%s3510_s23 + $0x70] sm:$0xff] }
 0x3a2   :  { %2282 = vpow2.f32 %v972_v20  ;;  %v618_v48 = vmul.f32 %v598_v60, %v538_v5 }
 0x3a4   :  { %v3075_v42 = vadd.f32 %v895_v49, %v618_v48 }
 0x3a6   :  { %v944_v61 = vsel %vm901_vm1, %v3075_v42, -inf  ;;  %v898_v45 = vpop.f32.mrf.mxu3 }
 0x3a8   :  { %2218 = vrot.lane.b32.xlu2 %v2217_v17, %s2507_s25  ;;  %v3070_v16 = vpop.eup %2282 }
 0x3a9   :  { %1005 = vadd.xlane.f32.xlu0 %v1004_v13  ;;  %v1007_v46 = vsel %vm901_vm1, %v3070_v16, 0.0 }
 0x3bb   :  { %v919_v3 = vpop.xlane.xlu2 %918 }
 0x3bc   :  { %v955_v17 = vsub.f32 %v2968_v58, %v919_v3 }
 0x3bd   :  { %2208 = vrot.lane.b32.xlu0 %v2207_v44, %s2507_s25 }
 0x3be   :  { %v976_v55 = vmul.f32 1.442695, %v955_v17 }
 0x3c0   :  { %2284 = vpow2.f32 %v976_v55 }
 0x3c6   :  { %v904_v7 = vpop.xlane.xlu1 %903  ;;  %v3081_v8 = vpop.eup %2284 }
 0x3c7   :  { %v1013_v9 = vsel %vm901_vm1, %v3081_v8, 0.0  ;;  %v950_v63 = vsub.f32 %v2980_v11, %v904_v7  ;;  %v539_v11 = vld [vmem:[%s3510_s23 + $0x78] sm:$0xff]  ;;  %s2508_s23 = smov 24  }
 0x3c8   :  { %v619_v24 = vmul.f32 %v3034_v39, %v539_v11 }
 0x3c9   :  { %v925_v38 = vpop.xlane.xlu0 %924  ;;  %v966_v28 = vmul.f32 1.442695, %v950_v63 }
 0x3ca   :  { %v957_v30 = vsub.f32 %v2987_v31, %v925_v38  ;;  %v3111_v19 = vadd.f32 %v898_v45, %v619_v24 }
 0x3cb   :  { %1008 = vadd.xlane.f32.xlu1 %v1007_v46 }
 0x3cc   :  { %v980_v60 = vmul.f32 1.442695, %v957_v30  ;;  %v947_v51 = vsel %vm901_vm1, %v3111_v19, -inf }
 0x3ce   :  { %v934_v44 = vpop.xlane.xlu1 %933 }
 0x3cf   :  { %v960_v57 = vsub.f32 %v2991_v36, %v934_v44 }
 0x3d1   :  { %v986_v58 = vmul.f32 1.442695, %v960_v57  ;;  %945 = vmax.xlane.f32.xlu2 %v944_v61 }
 0x3d3   :  { %2286 = vpow2.f32 %v986_v58 }
 0x3d4   :  { %2288 = vpow2.f32 %v980_v60 }
 0x3d5   :  { %2290 = vpow2.f32 %v966_v28 }
 0x3d6   :  { %v922_v37 = vpop.xlane.xlu1 %921 }
 0x3d7   :  { %v956_v4 = vsub.f32 %v2998_v40, %v922_v37 }
 0x3d9   :  { %v3085_v10 = vpop.eup %2286  ;;  %1014 = vadd.xlane.f32.xlu2 %v1013_v9  ;;  %v978_v47 = vmul.f32 1.442695, %v956_v4 }
 0x3da   :  { %v1028_v31 = vsel %vm901_vm1, %v3085_v10, 0.0  ;;  %v3089_v36 = vpop.eup %2288 }
 0x3db   :  { %1029 = vadd.xlane.f32.xlu1 %v1028_v31  ;;  %v1019_v15 = vsel %vm901_vm1, %v3089_v36, 0.0  ;;  %v3102_v43 = vpop.eup %2290  ;;  %2292 = vpow2.f32 %v978_v47 }
 0x3dc   :  { %v998_v22 = vsel %vm901_vm1, %v3102_v43, 0.0 }
 0x3e1   :  { %1020 = vadd.xlane.f32.xlu2 %v1019_v15  ;;  %v3117_v13 = vpop.eup %2292 }
 0x3e2   :  { %v1016_v0 = vsel %vm901_vm1, %v3117_v13, 0.0 }
 0x3e7   :  { %930 = vmax.xlane.f32.xlu0 %v929_v35 }
 0x3eb   :  { %v3123_v7 = vpop.xlane.xlu1 %1002 }
 0x3ec   :  { %vm1066_vm7 = vweird.f32 %v3123_v7 }
 0x3ef   :  { %999 = vadd.xlane.f32.xlu0 %v998_v22 }
 0x3f3   :  { %v3113_v53 = vpop.xlane.xlu2 %936 }
 0x3f7   :  { %948 = vmax.xlane.f32.xlu0 %v947_v51 }
 0x3fb   :  { %v943_v40 = vpop.xlane.xlu2 %942  ;;  %v928_v55 = vpop.xlane.xlu1 %927 }
 0x3fc   :  { %v963_v52 = vsub.f32 %v3020_v41, %v943_v40  ;;  %v958_v9 = vsub.f32 %v3025_v26, %v928_v55 }
 0x3fe   :  { %v992_v20 = vmul.f32 1.442695, %v963_v52  ;;  %v982_v23 = vmul.f32 1.442695, %v958_v9 }
 0x3ff   :  { %1017 = vadd.xlane.f32.xlu0 %v1016_v0  ;;  %v916_v39 = vpop.xlane.xlu0 %915 }
 0x400   :  { %2294 = vpow2.f32 %v992_v20  ;;  %v954_v3 = vsub.f32 %v3032_v29, %v916_v39 }
 0x402   :  { %v974_v5 = vmul.f32 1.442695, %v954_v3 }
 0x403   :  { %v2214_v17 = vpop.permute.xlu2 %2213 }
 0x404   :  { %2296 = vpow2.f32 %v974_v5  ;;  %v2215_v48 = vunpack.i.l.bf16 %v2214_v17  ;;  %v2216_v31 = vunpack.i.h.bf16 %v2214_v17 }
 0x406   :  { %v3125_v46 = vpop.eup %2294  ;;  %1417 = vmatpush.msrb.mxu3 %v2215_v48 }
 0x407   :  { %v1037_v41 = vsel %vm901_vm1, %v3125_v46, 0.0 }
 0x408   :  { %1038 = vadd.xlane.f32.xlu2 %v1037_v41 }
 0x40a   :  { %v3129_v49 = vpop.eup %2296 }
 0x40b   :  { %v2219_v38 = vpop.permute.xlu2 %2218  ;;  %v1010_v29 = vsel %vm901_vm1, %v3129_v49, 0.0 }
 0x40c   :  { %v2220_v44 = vunpack.i.l.bf16 %v2219_v38  ;;  %1011 = vadd.xlane.f32.xlu1 %v1010_v29  ;;  %v2221_v63 = vunpack.i.h.bf16 %v2219_v38 }
 0x40e   :  { %1418 = vmatpush.msrb.mxu3 %v2220_v44 }
 0x413   :  { %v2204_v30 = vpop.permute.xlu1 %2203 }
 0x414   :  { %v2205_v57 = vunpack.i.l.bf16 %v2204_v30  ;;  %v940_v61 = vpop.xlane.xlu0 %939  ;;  %v2206_v60 = vunpack.i.h.bf16 %v2204_v30 }
 0x415   :  { %v962_v58 = vsub.f32 %v3042_v54, %v940_v61  ;;  %v2227_v54 = vpack.i.bf16 %v2806_v62, %v2734_v56 }
 0x416   :  { %1382 = vmatpush.msrb.mxu2 %v2205_v57 }
 0x417   :  { %v990_v12 = vmul.f32 1.442695, %v962_v58 }
 0x418   :  { %1383 = vmatpush.msrb.mxu2 %v2206_v60 }
 0x419   :  { %2298 = vpow2.f32 %v990_v12  ;;  %v1072_v12 = vand.u32 2147483648, %v3123_v7 }
 0x41a   :  { %1522 = vmatpush.msra.mxu2 %v2216_v31  ;;  %2300 = vpow2.f32 %v982_v23 }
 0x41c   :  { %1523 = vmatpush.msra.mxu2 %v2221_v63  ;;  %v3144_v26 = vpop.xlane.xlu0 %1005 }
 0x41f   :  { %v3135_v15 = vpop.eup %2298 }
 0x420   :  { %v1034_v28 = vsel %vm901_vm1, %v3135_v15, 0.0  ;;  %v3141_v35 = vpop.eup %2300 }
 0x421   :  { %1035 = vadd.xlane.f32.xlu2 %v1034_v28  ;;  %v1022_v37 = vsel %vm901_vm1, %v3141_v35, 0.0  ;;  %v1070_v28 = vand.u32 2147483647, %v3123_v7 }
 0x423   :  { %vm1071_vm9 = vcmp.eq.f32.partialorder %v1070_v28, 8.507059e+37 }
 0x425   :  { %2228 = vrot.lane.b32.xlu1 %v2227_v54, %s2507_s25 }
 0x429   :  { %1023 = vadd.xlane.f32.xlu2 %v1022_v37 }
 0x42d   :  { %2238 = vrot.lane.b32.xlu1 %v2237_v34, %s2507_s25 }
 0x42f   :  { %v2209_v11 = vpop.permute.xlu0 %2208 }
 0x430   :  { %v2210_v4 = vunpack.i.l.bf16 %v2209_v11  ;;  %v2211_v22 = vunpack.i.h.bf16 %v2209_v11 }
 0x432   :  { %1312 = vmatpush.msra.mxu0 %v2210_v4 }
 0x434   :  { %1313 = vmatpush.msra.mxu0 %v2211_v22  ;;  %v1073_v22 = vor.u32 1.1754944e-38, %v1072_v12 }
 0x43e   :  { %v3170_v57 = vpop.xlane.xlu1 %1008 }
 0x444   :  { %v946_v56 = vpop.xlane.xlu2 %945 }
 0x445   :  { %v964_v62 = vsub.f32 %v3075_v42, %v946_v56 }
 0x447   :  { %v994_v45 = vmul.f32 1.442695, %v964_v62 }
 0x449   :  { %2302 = vpow2.f32 %v994_v45 }
 0x44a   :  { %2304 = vrcp.f32 %v3123_v7 }
 0x44c   :  { %v3159_v34 = vpop.xlane.xlu2 %1014 }
 0x44d   :  { %v1130_v25 = vand.u32 2147483647, %v3159_v34 }
 0x44e   :  { %v3182_v56 = vpop.xlane.xlu1 %1029 }
 0x44f   :  { %v3153_v24 = vpop.eup %2302 }
 0x450   :  { %v1040_v47 = vsel %vm901_vm1, %v3153_v24, 0.0  ;;  %v2305_v52 = vpop.eup %2304 }
 0x451   :  { %1041 = vadd.xlane.f32.xlu0 %v1040_v47  ;;  %v1062_v20 = vmul.f32 %v2305_v52, %v3123_v7  ;;  %vm1067_vm6 = vweird.f32 %v2305_v52 }
 0x452   :  { %vm1068_vm8 = vmor %vm1066_vm7, %vm1067_vm6 }
 0x453   :  { %v1063_v3 = vsub.f32 1.0, %v1062_v20 }
 0x455   :  { %v1064_v29 = vmul.f32 %v2305_v52, %v1063_v3 }
 0x45a   :  { %v931_v51 = vpop.xlane.xlu0 %930 }
 0x45b   :  { %v959_v18 = vsub.f32 %v3098_v32, %v931_v51  ;;  %v3166_v32 = vpop.xlane.xlu2 %1020 }
 0x45d   :  { %v984_v33 = vmul.f32 1.442695, %v959_v18  ;;  %v2222_v18 = vpack.i.bf16 %v2818_v6, %v2745_v1  ;;  %v1162_v6 = vand.u32 2147483648, %v3166_v32 }
 0x45f   :  { %2306 = vpow2.f32 %v984_v33 }
 0x462   :  { %v1000_v40 = vpop.xlane.xlu0 %999 }
 0x463   :  { %2308 = vrcp.f32 %v1000_v40  ;;  %v1057_v55 = vand.u32 2147483648, %v1000_v40  ;;  %v1055_v30 = vand.u32 2147483647, %v1000_v40  ;;  %vm1051_vm3 = vweird.f32 %v1000_v40 }
 0x464   :  { %2310 = vrcp.f32 %v3166_v32 }
 0x465   :  { %v3161_v42 = vpop.eup %2306  ;;  %v1058_v58 = vor.u32 1.1754944e-38, %v1057_v55  ;;  %vm1056_vm5 = vcmp.eq.f32.partialorder %v1055_v30, 8.507059e+37  ;;  %v1160_v55 = vand.u32 2147483647, %v3166_v32  ;;  %v1163_v30 = vor.u32 1.1754944e-38, %v1162_v6 }
 0x466   :  { %v1025_v0 = vsel %vm901_vm1, %v3161_v42, 0.0 }
 0x467   :  { %1026 = vadd.xlane.f32.xlu2 %v1025_v0 }
 0x469   :  { %v2309_v39 = vpop.eup %2308 }
 0x46a   :  { %v1047_v5 = vmul.f32 %v2309_v39, %v1000_v40  ;;  %v949_v17 = vpop.xlane.xlu0 %948  ;;  %vm1052_vm2 = vweird.f32 %v2309_v39  ;;  %v2311_v31 = vpop.eup %2310 }
 0x46b   :  { %v965_v48 = vsub.f32 %v3111_v19, %v949_v17  ;;  %vm1053_vm4 = vmor %vm1051_vm3, %vm1052_vm2  ;;  %v1065_v19 = vadd.f32 %v2305_v52, %v1064_v29  ;;  %v1152_v37 = vmul.f32 %v2311_v31, %v3166_v32  ;;  %vm1157_vm14 = vweird.f32 %v2311_v31 }
 0x46c   :  { %v1048_v41 = vsub.f32 1.0, %v1047_v5  ;;  %vm1156_vm2 = vweird.f32 %v3166_v32 }
 0x46d   :  { %v996_v38 = vmul.f32 1.442695, %v965_v48  ;;  %v1069_v4 = vsel %vm1068_vm8, %v2305_v52, %v1065_v19  ;;  %v1153_v7 = vsub.f32 1.0, %v1152_v37  ;;  %vm1158_vm3 = vmor %vm1156_vm2, %vm1157_vm14 }
 0x46e   :  { %v1049_v44 = vmul.f32 %v2309_v39, %v1048_v41 }
 0x46f   :  { %2312 = vpow2.f32 %v996_v38  ;;  %v1154_v40 = vmul.f32 %v2311_v31, %v1153_v7 }
 0x470   :  { %v1050_v61 = vadd.f32 %v2309_v39, %v1049_v44 }
 0x471   :  { %v1155_v17 = vadd.f32 %v2311_v31, %v1154_v40 }
 0x472   :  { %v1054_v60 = vsel %vm1053_vm4, %v2309_v39, %v1050_v61  ;;  %v1018_v9 = vpop.xlane.xlu0 %1017  ;;  %vm1161_vm4 = vcmp.eq.f32.partialorder %v1160_v55, 8.507059e+37 }
 0x473   :  { %v1059_v63 = vsel %vm1056_vm5, %v1058_v58, %v1054_v60  ;;  %2314 = vrcp.f32 %v1018_v9  ;;  %v1147_v33 = vand.u32 2147483648, %v1018_v9  ;;  %v1145_v20 = vand.u32 2147483647, %v1018_v9 }
 0x474   :  { %v1060_v23 = vmul.f32 %v3102_v43, %v1059_v63  ;;  %v1074_v43 = vsel %vm1071_vm9, %v1073_v22, %v1069_v4  ;;  %2316 = vrcp.f32 %v3159_v34  ;;  %vm1141_vm11 = vweird.f32 %v1018_v9 }
 0x475   :  { %v3176_v54 = vpop.eup %2312  ;;  %v1075_v51 = vmul.f32 %v3003_v50, %v1074_v43  ;;  %v1148_v5 = vor.u32 1.1754944e-38, %v1147_v33  ;;  %vm1146_vm13 = vcmp.eq.f32.partialorder %v1145_v20, 8.507059e+37  ;;  %v1159_v29 = vsel %vm1158_vm3, %v2311_v31, %v1155_v17 }
 0x476   :  { %2140 = vmatmul.msk.f32.vlgmr.msra.gmra.mxu0 %vm901_vm1, %v1060_v23  ;;  %v1043_v11 = vsel %vm901_vm1, %v3176_v54, 0.0  ;;  %v1164_v60 = vsel %vm1161_vm4, %v1163_v30, %v1159_v29  ;;  %v961_v43 = vsub.f32 %v3013_v59, %v3113_v53 }
 0x477   :  { %1044 = vadd.xlane.f32.xlu0 %v1043_v11  ;;  %v1165_v32 = vmul.f32 %v3089_v36, %v1164_v60  ;;  %v1132_v11 = vand.u32 2147483648, %v3159_v34 }
 0x479   :  { %v2315_v62 = vpop.eup %2314  ;;  %v1133_v36 = vor.u32 1.1754944e-38, %v1132_v11 }
 0x47a   :  { %v1137_v45 = vmul.f32 %v2315_v62, %v1018_v9  ;;  %vm1142_vm10 = vweird.f32 %v2315_v62  ;;  %v2317_v39 = vpop.eup %2316 }
 0x47b   :  { %vm1143_vm12 = vmor %vm1141_vm11, %vm1142_vm10  ;;  %v1122_v1 = vmul.f32 %v2317_v39, %v3159_v34  ;;  %vm1127_vm8 = vweird.f32 %v2317_v39  ;;  %vm1126_vm10 = vweird.f32 %v3159_v34 }
 0x47c   :  { %v1138_v47 = vsub.f32 1.0, %v1137_v45  ;;  %vm1128_vm11 = vmor %vm1126_vm10, %vm1127_vm8 }
 0x47d   :  { %v1123_v44 = vsub.f32 1.0, %v1122_v1 }
 0x47e   :  { %v1139_v52 = vmul.f32 %v2315_v62, %v1138_v47  ;;  %2141 = vmatmul.msk.f32.gmra.mxu0 %vm901_vm1, %v1075_v51  ;;  %v988_v51 = vmul.f32 1.442695, %v961_v43 }
 0x47f   :  { %v1012_v0 = vpop.xlane.xlu1 %1011  ;;  %2223 = vrot.lane.b32.xlu2 %v2222_v18, %s2507_s25  ;;  %v1124_v19 = vmul.f32 %v2317_v39, %v1123_v44 }
 0x480   :  { %v1140_v3 = vadd.f32 %v2315_v62, %v1139_v52  ;;  %2318 = vrcp.f32 %v1012_v0  ;;  %v1117_v9 = vand.u32 2147483648, %v1012_v0  ;;  %v1115_v63 = vand.u32 2147483647, %v1012_v0 }
 0x481   :  { %vm1111_vm6 = vweird.f32 %v1012_v0  ;;  %v1125_v37 = vadd.f32 %v2317_v39, %v1124_v19 }
 0x482   :  { %v1144_v50 = vsel %vm1143_vm12, %v2315_v62, %v1140_v3  ;;  %v1118_v23 = vor.u32 1.1754944e-38, %v1117_v9  ;;  %vm1116_vm9 = vcmp.eq.f32.partialorder %v1115_v63, 8.507059e+37  ;;  %vm1131_vm12 = vcmp.eq.f32.partialorder %v1130_v25, 8.507059e+37 }
 0x483   :  { %v1149_v48 = vsel %vm1146_vm13, %v1148_v5, %v1144_v50 }
 0x484   :  { %v1150_v41 = vmul.f32 %v3117_v13, %v1149_v48  ;;  %v1039_v13 = vpop.xlane.xlu2 %1038 }
 0x485   :  { %2320 = vrcp.f32 %v1039_v13  ;;  %v1252_v5 = vand.u32 2147483648, %v1039_v13  ;;  %v1250_v1 = vand.u32 2147483647, %v1039_v13 }
 0x486   :  { %v2319_v38 = vpop.eup %2318  ;;  %2146 = vmatmul.msk.f32.vlgmr.msrb.gmra.mxu3 %vm901_vm1, %v1150_v41 }
 0x487   :  { %v1107_v61 = vmul.f32 %v2319_v38, %v1012_v0  ;;  %vm1112_vm5 = vweird.f32 %v2319_v38  ;;  %v1253_v41 = vor.u32 1.1754944e-38, %v1252_v5 }
 0x488   :  { %vm1113_vm7 = vmor %vm1111_vm6, %vm1112_vm5  ;;  %vm1246_vm5 = vweird.f32 %v1039_v13 }
 0x489   :  { %v1108_v58 = vsub.f32 1.0, %v1107_v61 }
 0x48b   :  { %v1109_v12 = vmul.f32 %v2319_v38, %v1108_v58  ;;  %2233 = vrot.lane.b32.xlu0 %v2232_v27, %s2507_s25  ;;  %v1129_v27 = vsel %vm1128_vm11, %v2317_v39, %v1125_v37  ;;  %v2321_v62 = vpop.eup %2320 }
 0x48c   :  { %v1134_v7 = vsel %vm1131_vm12, %v1133_v36, %v1129_v27  ;;  %v1242_v45 = vmul.f32 %v2321_v62, %v1039_v13  ;;  %vm1247_vm4 = vweird.f32 %v2321_v62 }
 0x48d   :  { %v1110_v31 = vadd.f32 %v2319_v38, %v1109_v12  ;;  %v1135_v47 = vmul.f32 %v3081_v8, %v1134_v7  ;;  %vm1248_vm6 = vmor %vm1246_vm5, %vm1247_vm4 }
 0x48e   :  { %2147 = vmatmul.msk.f32.gmra.mxu3 %vm901_vm1, %v1165_v32  ;;  %v1243_v34 = vsub.f32 1.0, %v1242_v45  ;;  %v1085_v32 = vand.u32 2147483647, %v3144_v26 }
 0x48f   :  { %v1114_v28 = vsel %vm1113_vm7, %v2319_v38, %v1110_v31  ;;  %vm1251_vm7 = vcmp.eq.f32.partialorder %v1250_v1, 8.507059e+37 }
 0x490   :  { %v1119_v4 = vsel %vm1116_vm9, %v1118_v23, %v1114_v28  ;;  %v1244_v52 = vmul.f32 %v2321_v62, %v1243_v34  ;;  %vm1081_vm9 = vweird.f32 %v3144_v26  ;;  %vm1086_vm12 = vcmp.eq.f32.partialorder %v1085_v32, 8.507059e+37 }
 0x491   :  { %v1120_v21 = vmul.f32 %v3129_v49, %v1119_v4  ;;  %v1102_v34 = vand.u32 2147483648, %v3170_v57 }
 0x492   :  { %v1245_v3 = vadd.f32 %v2321_v62, %v1244_v52 }
 0x493   :  { %2144 = vmatmul.msk.f32.vlgmr.msrb.gmra.mxu2 %vm901_vm1, %v1120_v21 }
 0x494   :  { %v1036_v22 = vpop.xlane.xlu2 %1035  ;;  %v1249_v48 = vsel %vm1248_vm6, %v2321_v62, %v1245_v3  ;;  %v1100_v3 = vand.u32 2147483647, %v3170_v57 }
 0x495   :  { %2322 = vrcp.f32 %v1036_v22  ;;  %v1237_v40 = vand.u32 2147483648, %v1036_v22  ;;  %v1235_v0 = vand.u32 2147483647, %v1036_v22  ;;  %vm1231_vm14 = vweird.f32 %v1036_v22 }
 0x496   :  { %2324 = vpow2.f32 %v988_v51  ;;  %v1254_v55 = vsel %vm1251_vm7, %v1253_v41, %v1249_v48 }
 0x497   :  { %v1238_v59 = vor.u32 1.1754944e-38, %v1237_v40  ;;  %vm1236_vm3 = vcmp.eq.f32.partialorder %v1235_v0, 8.507059e+37  ;;  %v1255_v38 = vmul.f32 %v3125_v46, %v1254_v55  ;;  %2326 = vrcp.f32 %v3144_v26  ;;  %v2229_v31 = vpop.permute.xlu1 %2228 }
 0x498   :  { %v1087_v46 = vand.u32 2147483648, %v3144_v26 }
 0x49a   :  { %v1088_v37 = vor.u32 1.1754944e-38, %v1087_v46 }
 0x49b   :  { %v2323_v49 = vpop.eup %2322  ;;  %2145 = vmatmul.msk.f32.gmra.mxu2 %vm901_vm1, %v1135_v47 }
 0x49c   :  { %v1227_v18 = vmul.f32 %v2323_v49, %v1036_v22  ;;  %vm1232_vm13 = vweird.f32 %v2323_v49  ;;  %v3211_v53 = vpop.eup %2324  ;;  %v1024_v29 = vpop.xlane.xlu2 %1023 }
 0x49d   :  { %vm1233_vm2 = vmor %vm1231_vm14, %vm1232_vm13  ;;  %v1031_v6 = vsel %vm901_vm1, %v3211_v53, 0.0  ;;  %2328 = vrcp.f32 %v1024_v29  ;;  %v1177_v25 = vand.u32 2147483648, %v1024_v29  ;;  %vm1171_vm13 = vweird.f32 %v1024_v29 }
 0x49e   :  { %v1228_v33 = vsub.f32 1.0, %v1227_v18  ;;  %2330 = vrcp.f32 %v3170_v57  ;;  %v1175_v36 = vand.u32 2147483647, %v1024_v29 }
 0x49f   :  { %2332 = vrcp.f32 %v3182_v56  ;;  %v1178_v45 = vor.u32 1.1754944e-38, %v1177_v25 }
 0x4a0   :  { %v1229_v20 = vmul.f32 %v2323_v49, %v1228_v33 }
 0x4a2   :  { %v1230_v39 = vadd.f32 %v2323_v49, %v1229_v20  ;;  %v2239_v20 = vpop.permute.xlu1 %2238 }
 0x4a3   :  { %v2240_v1 = vunpack.i.l.bf16 %v2239_v20 }
 0x4a4   :  { %v1234_v8 = vsel %vm1233_vm2, %v2323_v49, %v1230_v39  ;;  %vm1096_vm2 = vweird.f32 %v3170_v57 }
 0x4a5   :  { %v1239_v50 = vsel %vm1236_vm3, %v1238_v59, %v1234_v8  ;;  %vm1176_vm3 = vcmp.eq.f32.partialorder %v1175_v36, 8.507059e+37  ;;  %v2230_v59 = vunpack.i.l.bf16 %v2229_v31 }
 0x4a6   :  { %v1240_v17 = vmul.f32 %v3135_v15, %v1239_v50  ;;  %v2327_v15 = vpop.eup %2326 }
 0x4a7   :  { %v1077_v44 = vmul.f32 %v2327_v15, %v3144_v26  ;;  %v2329_v30 = vpop.eup %2328  ;;  %vm1082_vm8 = vweird.f32 %v2327_v15 }
 0x4a8   :  { %2152 = vmatmul.msk.f32.vlgmr.msra.gmra.mxu2 %vm901_vm1, %v1240_v17  ;;  %1032 = vadd.xlane.f32.xlu2 %v1031_v6  ;;  %v1167_v58 = vmul.f32 %v2329_v30, %v1024_v29  ;;  %v3222_v19 = vpop.eup %2330  ;;  %vm1083_vm10 = vmor %vm1081_vm9, %vm1082_vm8  ;;  %vm1172_vm11 = vweird.f32 %v2329_v30  ;;  %vm1101_vm9 = vcmp.eq.f32.partialorder %v1100_v3, 8.507059e+37 }
 0x4a9   :  { %v1078_v61 = vsub.f32 1.0, %v1077_v44  ;;  %v1092_v63 = vmul.f32 %v3222_v19, %v3170_v57  ;;  %v3233_v21 = vpop.eup %2332  ;;  %vm1173_vm14 = vmor %vm1171_vm13, %vm1172_vm11  ;;  %vm1097_vm4 = vweird.f32 %v3222_v19  ;;  %v2241_v57 = vunpack.i.h.bf16 %v2239_v20 }
 0x4aa   :  { %v1168_v9 = vsub.f32 1.0, %v1167_v58  ;;  %v1197_v62 = vmul.f32 %v3233_v21, %v3182_v56  ;;  %vm3253_vm6 = vmor %vm1096_vm2, %vm1097_vm4  ;;  %vm1202_vm11 = vweird.f32 %v3233_v21 }
 0x4ab   :  { %v1079_v60 = vmul.f32 %v2327_v15, %v1078_v61  ;;  %v1093_v11 = vsub.f32 1.0, %v1092_v63 }
 0x4ac   :  { %v1169_v13 = vmul.f32 %v2329_v30, %v1168_v9  ;;  %v1198_v52 = vsub.f32 1.0, %v1197_v62  ;;  %v1207_v9 = vand.u32 2147483648, %v3182_v56 }
 0x4ad   :  { %v1080_v12 = vadd.f32 %v2327_v15, %v1079_v60  ;;  %v1094_v22 = vmul.f32 %v3222_v19, %v1093_v11 }
 0x4ae   :  { %v1170_v4 = vadd.f32 %v2329_v30, %v1169_v13  ;;  %v1199_v41 = vmul.f32 %v3233_v21, %v1198_v52 }
 0x4af   :  { %v1084_v28 = vsel %vm1083_vm10, %v2327_v15, %v1080_v12  ;;  %v1095_v39 = vadd.f32 %v3222_v19, %v1094_v22 }
 0x4b0   :  { %2153 = vmatmul.msk.f32.gmra.mxu2 %vm901_vm1, %v1255_v38  ;;  %v1089_v27 = vsel %vm1086_vm12, %v1088_v37, %v1084_v28  ;;  %v1174_v43 = vsel %vm1173_vm14, %v2329_v30, %v1170_v4  ;;  %v1103_v38 = vor.u32 1.1754944e-38, %v1102_v34  ;;  %v1200_v60 = vadd.f32 %v3233_v21, %v1199_v41 }
 0x4b1   :  { %v1090_v47 = vmul.f32 %v3054_v2, %v1089_v27  ;;  %v1179_v18 = vsel %vm1176_vm3, %v1178_v45, %v1174_v43  ;;  %v2231_v2 = vunpack.i.h.bf16 %v2229_v31  ;;  %vm1201_vm12 = vweird.f32 %v3182_v56 }
 0x4b2   :  { %v1180_v50 = vmul.f32 %v3141_v35, %v1179_v18  ;;  %v1099_v35 = vsel %vm3253_vm6, %v3222_v19, %v1095_v39  ;;  %v1205_v19 = vand.u32 2147483647, %v3182_v56  ;;  %vm1203_vm13 = vmor %vm1201_vm12, %vm1202_vm11  ;;  %v1208_v31 = vor.u32 1.1754944e-38, %v1207_v9 }
 0x4b3   :  { %v1104_v61 = vsel %vm1101_vm9, %v1103_v38, %v1099_v35  ;;  %v1204_v13 = vsel %vm1203_vm13, %v3233_v21, %v1200_v60  ;;  %v1627_v60 = vld [vmem:[#allocation7] sm:$0xff] }
 0x4b4   :  { %v1105_v12 = vmul.f32 %v3070_v16, %v1104_v61  ;;  %vm1206_vm14 = vcmp.eq.f32.partialorder %v1205_v19, 8.507059e+37  ;;  %v1629_v61 = vld [vmem:[#allocation7 + $0x10] sm:$0xff] }
 0x4c4   :  { %v3235_v26 = vpop.xlane.xlu0 %1041 }
 0x4c5   :  { %vm1261_vm3 = vweird.f32 %v3235_v26  ;;  %v1265_v4 = vand.u32 2147483647, %v3235_v26 }
 0x4da   :  { %v3230_v23 = vpop.xlane.xlu2 %1026 }
 0x4db   :  { %2334 = vrcp.f32 %v3230_v23  ;;  %v1192_v8 = vand.u32 2147483648, %v3230_v23  ;;  %v1190_v17 = vand.u32 2147483647, %v3230_v23  ;;  %vm1186_vm7 = vweird.f32 %v3230_v23 }
 0x4dc   :  { %2336 = vrcp.f32 %v3235_v26 }
 0x4dd   :  { %v1193_v29 = vor.u32 1.1754944e-38, %v1192_v8  ;;  %vm1191_vm10 = vcmp.eq.f32.partialorder %v1190_v17, 8.507059e+37 }
 0x4e1   :  { %v2335_v7 = vpop.eup %2334 }
 0x4e2   :  { %v1182_v51 = vmul.f32 %v2335_v7, %v3230_v23  ;;  %v2224_v49 = vpop.permute.xlu2 %2223  ;;  %vm1187_vm5 = vweird.f32 %v2335_v7  ;;  %v2337_v48 = vpop.eup %2336  ;;  %v1209_v23 = vsel %vm1206_vm14, %v1208_v31, %v1204_v13  ;;  %vm1622_vm14 = vcmask 195584  }
 0x4e3   :  { %v2226_v33 = vunpack.i.h.bf16 %v2224_v49  ;;  %v2225_v40 = vunpack.i.l.bf16 %v2224_v49  ;;  %vm1188_vm8 = vmor %vm1186_vm7, %vm1187_vm5  ;;  %v1257_v30 = vmul.f32 %v2337_v48, %v3235_v26  ;;  %v1210_v56 = vmul.f32 %v3085_v10, %v1209_v23 }
 0x4e4   :  { %v1183_v0 = vsub.f32 1.0, %v1182_v51  ;;  %vm1262_vm2 = vweird.f32 %v2337_v48  ;;  %vm1266_vm5 = vcmp.eq.f32.partialorder %v1265_v4, 8.507059e+37 }
 0x4e5   :  { %1347 = vmatpush.msra.mxu1 %v2225_v40  ;;  %1452 = vmatpush.msrb.mxu0 %v2226_v33  ;;  %v1258_v63 = vsub.f32 1.0, %v1257_v30  ;;  %vm1263_vm4 = vmor %vm1261_vm3, %vm1262_vm2  ;;  %v1630_v30 = vld [vmem:[#allocation7 + $0x18] sm:$0xff] }
 0x4e6   :  { %v1184_v5 = vmul.f32 %v2335_v7, %v1183_v0 }
 0x4e7   :  { %1348 = vmatpush.msra.mxu1 %v2230_v59  ;;  %1453 = vmatpush.msrb.mxu0 %v2231_v2  ;;  %v1259_v28 = vmul.f32 %v2337_v48, %v1258_v63 }
 0x4e8   :  { %2142 = vmatmul.msk.f32.vlgmr.msra.gmra.mxu1 %vm901_vm1, %v1090_v47  ;;  %2148 = vmatmul.msk.f32.vlgmr.msrb.gmra.mxu0 %vm901_vm1, %v1180_v50  ;;  %v1185_v55 = vadd.f32 %v2335_v7, %v1184_v5 }
 0x4e9   :  { %1487 = vmatpush.msrb.mxu1 %v2240_v1  ;;  %v1260_v11 = vadd.f32 %v2337_v48, %v1259_v28  ;;  %1659 = vmatpush.msra.mxu0 %v1630_v30 }
 0x4ea   :  { %v1045_v15 = vpop.xlane.xlu0 %1044  ;;  %v1189_v44 = vsel %vm1188_vm8, %v2335_v7, %v1185_v55 }
 0x4eb   :  { %1488 = vmatpush.msrb.mxu1 %v2241_v57  ;;  %2338 = vrcp.f32 %v1045_v15  ;;  %v1194_v58 = vsel %vm1191_vm10, %v1193_v29, %v1189_v44  ;;  %v1264_v21 = vsel %vm1263_vm4, %v2337_v48, %v1260_v11  ;;  %v1282_v43 = vand.u32 2147483648, %v1045_v15  ;;  %1660 = vmatpush.msra.mxu0 %v1629_v61 }
 0x4ec   :  { %v1195_v46 = vmul.f32 %v3161_v42, %v1194_v58  ;;  %v1267_v42 = vand.u32 2147483648, %v3235_v26  ;;  %vm1276_vm7 = vweird.f32 %v1045_v15  ;;  %v1280_v47 = vand.u32 2147483647, %v1045_v15  ;;  %v1628_v58 = vld [vmem:[#allocation7 + $0x8] sm:$0xff] }
 0x4ed   :  { %v1283_v51 = vor.u32 1.1754944e-38, %v1282_v43  ;;  %1661 = vmatpush.msra.mxu0 %v1628_v58 }
 0x4ee   :  { %v1268_v27 = vor.u32 1.1754944e-38, %v1267_v42  ;;  %vm1281_vm9 = vcmp.eq.f32.partialorder %v1280_v47, 8.507059e+37 }
 0x4ef   :  { %1662 = vmatpush.msra.mxu0 %v1627_v60 }
 0x4f0   :  { %2143 = vmatmul.msk.f32.gmra.mxu1 %vm901_vm1, %v1105_v12  ;;  %2149 = vmatmul.msk.f32.gmra.mxu0 %vm901_vm1, %v1195_v46  ;;  %v1269_v22 = vsel %vm1266_vm5, %v1268_v27, %v1264_v21 }
 0x4f1   :  { %v2339_v32 = vpop.eup %2338  ;;  %v1270_v45 = vmul.f32 %v3153_v24, %v1269_v22 }
 0x4f2   :  { %v1272_v37 = vmul.f32 %v2339_v32, %v1045_v15  ;;  %vm1277_vm6 = vweird.f32 %v2339_v32 }
 0x4f3   :  { %vm1278_vm8 = vmor %vm1276_vm7, %vm1277_vm6  ;;  %v1315_v1 = vpop.f32.mrf.mxu0 }
 0x4f4   :  { %v1273_v16 = vsub.f32 1.0, %v1272_v37 }
 0x4f6   :  { %v1274_v25 = vmul.f32 %v2339_v32, %v1273_v16 }
 0x4f8   :  { %2150 = vmatmul.msk.f32.vlgmr.msrb.gmra.mxu1 %vm901_vm1, %v1210_v56  ;;  %v1275_v10 = vadd.f32 %v2339_v32, %v1274_v25 }
 0x4fa   :  { %v1279_v26 = vsel %vm1278_vm8, %v2339_v32, %v1275_v10 }
 0x4fb   :  { %v1284_v49 = vsel %vm1281_vm9, %v1283_v51, %v1279_v26  ;;  %v1318_v6 = vpop.f32.mrf.mxu0  ;;  %v2358_v26 = vld [vmem:[#allocation2] sm:$0xff] }
 0x4fc   :  { %v1285_v34 = vmul.f32 %v3176_v54, %v1284_v49 }
 0x4fd   :  { %v2234_v36 = vpop.permute.xlu0 %2233 }
 0x4fe   :  { %v2235_v62 = vunpack.i.l.bf16 %v2234_v36  ;;  %v2236_v7 = vunpack.i.h.bf16 %v2234_v36 }
 0x500   :  { %1557 = vmatpush.msra.mxu3 %v2235_v62 }
 0x502   :  { %1558 = vmatpush.msra.mxu3 %v2236_v7  ;;  %v2247_v7 = vld [vmem:[%s3498_s10] ss:$0 sm:$0xff]  ;;  %s2077_s10 = sshll.u32 %s3505_s17, 4  ;;  %s2078_s10 = int_to_ptr.hbm [resolvable:$true] %s2077_s10 }
 0x503   :  { %2154 = vmatmul.msk.f32.vlgmr.msra.gmra.mxu3 %vm901_vm1, %v1270_v45 }
 0x509   :  { %v1420_v38 = vpop.f32.mrf.mxu3 }
 0x50b   :  { %2155 = vmatmul.msk.f32.gmra.mxu3 %vm901_vm1, %v1285_v34 }
 0x511   :  { %v1423_v57 = vpop.f32.mrf.mxu3 }
 0x516   :  { %v1385_v18 = vpop.f32.mrf.mxu2 }
 0x517   :  { %1570 = vrot.lane.b32.xlu0 %v1385_v18, %s2492_s1 }
 0x51b   :  { %v1033_v33 = vpop.xlane.xlu2 %1032 }
 0x51c   :  { %2340 = vrcp.f32 %v1033_v33  ;;  %v1222_v0 = vand.u32 2147483648, %v1033_v33  ;;  %v1220_v2 = vand.u32 2147483647, %v1033_v33  ;;  %vm1216_vm11 = vweird.f32 %v1033_v33 }
 0x51e   :  { %v1388_v52 = vpop.f32.mrf.mxu2  ;;  %v1223_v8 = vor.u32 1.1754944e-38, %v1222_v0  ;;  %vm1221_vm13 = vcmp.eq.f32.partialorder %v1220_v2, 8.507059e+37  ;;  %v2360_v0 = vld [vmem:[#allocation2 + $0x10] sm:$0xff] }
 0x522   :  { %v2341_v40 = vpop.eup %2340 }
 0x523   :  { %v1212_v24 = vmul.f32 %v2341_v40, %v1033_v33  ;;  %vm1217_vm10 = vweird.f32 %v2341_v40  ;;  %v2359_v33 = vld [vmem:[#allocation2 + $0x8] sm:$0xff] }
 0x524   :  { %vm1218_vm12 = vmor %vm1216_vm11, %vm1217_vm10 }
 0x525   :  { %v1213_v20 = vsub.f32 1.0, %v1212_v24 }
 0x527   :  { %v1214_v39 = vmul.f32 %v2341_v40, %v1213_v20 }
 0x529   :  { %v1215_v59 = vadd.f32 %v2341_v40, %v1214_v39 }
 0x52b   :  { %v1525_v54 = vpop.f32.mrf.mxu2  ;;  %v1219_v3 = vsel %vm1218_vm12, %v2341_v40, %v1215_v59 }
 0x52c   :  { %v1224_v5 = vsel %vm1221_vm13, %v1223_v8, %v1219_v3 }
 0x52d   :  { %v1225_v50 = vmul.f32 %v3211_v53, %v1224_v5 }
 0x52f   :  { %2151 = vmatmul.msk.f32.gmra.mxu1 %vm901_vm1, %v1225_v50 }
 0x533   :  { %v1528_v17 = vpop.f32.mrf.mxu2 }
 0x534   :  { %1604 = vrot.lane.b32.xlu2 %v1528_v17, %s2508_s23 }
 0x565   :  { %v1455_v48 = vpop.f32.mrf.mxu0  ;;  %v1350_v41 = vpop.f32.mrf.mxu1 }
 0x566   :  { %1586 = vrot.lane.b32.xlu1 %v1455_v48, %s2509_s26 }
 0x56d   :  { %v1458_v35 = vpop.f32.mrf.mxu0  ;;  %v1353_v55 = vpop.f32.mrf.mxu1 }
 0x56e   :  { %1572 = vrot.lane.b32.xlu1 %v1388_v52, %s2492_s1  ;;  %1588 = vrot.lane.b32.xlu0 %v1458_v35, %s2509_s26 }
 0x575   :  { %v1490_v53 = vpop.f32.mrf.mxu1 }
 0x576   :  { %1574 = vrot.lane.b32.xlu1 %v1420_v38, %s2492_s1  ;;  %1602 = vrot.lane.b32.xlu0 %v1525_v54, %s2508_s23  ;;  %v2361_v54 = vld [vmem:[#allocation2 + $0x18] sm:$0xff] }
 0x57e   :  { %1590 = vrot.lane.b32.xlu0 %v1490_v53, %s2509_s26 }
 0x586   :  { %v1560_v29 = vpop.f32.mrf.mxu3  ;;  %1576 = vrot.lane.b32.xlu0 %v1423_v57, %s2492_s1 }
 0x587   :  { %1606 = vrot.lane.b32.xlu1 %v1560_v29, %s2508_s23 }
 0x589   :  { %v1571_v9 = vpop.permute.xlu0 %1570 }
 0x58a   :  { %v1614_v46 = vsel %vm624_vm15, %v1315_v1, %v1571_v9 }
 0x58e   :  { %v1563_v15 = vpop.f32.mrf.mxu3  ;;  %v1605_v37 = vpop.permute.xlu2 %1604 }
 0x58f   :  { %1608 = vrot.lane.b32.xlu0 %v1563_v15, %s2508_s23 }
 0x5ac   :  { %v1493_v44 = vpop.f32.mrf.mxu1 }
 0x5ad   :  { %1592 = vrot.lane.b32.xlu1 %v1493_v44, %s2509_s26 }
 0x5d8   :  { %v1587_v19 = vpop.permute.xlu1 %1586 }
 0x5d9   :  { %v1618_v13 = vsel %vm901_vm1, %v1614_v46, %v1587_v19  ;;  %v1786_v46 = vld [vmem:[#allocation8 + $0x10] sm:$0xff] }
 0x5e0   :  { %v1589_v12 = vpop.permute.xlu0 %1588  ;;  %v1573_v63 = vpop.permute.xlu1 %1572 }
 0x5e1   :  { %v1615_v23 = vsel %vm624_vm15, %v1318_v6, %v1573_v63  ;;  %v1785_v63 = vld [vmem:[#allocation8 + $0x8] sm:$0xff] }
 0x5e2   :  { %v1619_v28 = vsel %vm901_vm1, %v1615_v23, %v1589_v12  ;;  %v1787_v12 = vld [vmem:[#allocation8 + $0x18] sm:$0xff] }
 0x5e3   :  { %v1624_v11 = vsel %vm1622_vm14, %v1619_v28, %v1605_v37  ;;  %1816 = vmatpush.msra.mxu1 %v1787_v12 }
 0x5e5   :  { %1817 = vmatpush.msra.mxu1 %v1786_v46 }
 0x5e7   :  { %1818 = vmatpush.msra.mxu1 %v1785_v63 }
 0x5e8   :  { %v1603_v32 = vpop.permute.xlu0 %1602  ;;  %v1575_v56 = vpop.permute.xlu1 %1574 }
 0x5e9   :  { %v1623_v31 = vsel %vm1622_vm14, %v1618_v13, %v1603_v32  ;;  %v1616_v42 = vsel %vm624_vm15, %v1350_v41, %v1575_v56  ;;  %v1784_v13 = vld [vmem:[#allocation8] sm:$0xff] }
 0x5ea   :  { %2156 = vmatmul.msk.f32.vlgmr.msra.gmra.mxu0 %vm126_vm0, %v1623_v31  ;;  %1819 = vmatpush.msra.mxu1 %v1784_v13 }
 0x5f0   :  { %v1591_v16 = vpop.permute.xlu0 %1590 }
 0x5f1   :  { %v1620_v4 = vsel %vm901_vm1, %v1616_v42, %v1591_v16 }
 0x5f2   :  { %2157 = vmatmul.msk.f32.gmra.mxu0 %vm126_vm0, %v1624_v11 }
 0x5f8   :  { %v1577_v27 = vpop.permute.xlu0 %1576 }
 0x5f9   :  { %v1607_v21 = vpop.permute.xlu1 %1606  ;;  %v1617_v36 = vsel %vm624_vm15, %v1353_v55, %v1577_v27 }
 0x5fa   :  { %v1625_v25 = vsel %vm1622_vm14, %v1620_v4, %v1607_v21 }
 0x5fb   :  { %2158 = vmatmul.msk.f32.gmra.mxu0 %vm126_vm0, %v1625_v25 }
 0x601   :  { %v1609_v62 = vpop.permute.xlu0 %1608 }
 0x61f   :  { %v1593_v22 = vpop.permute.xlu1 %1592 }
 0x620   :  { %v1621_v10 = vsel %vm901_vm1, %v1617_v36, %v1593_v22 }
 0x621   :  { %v1626_v43 = vsel %vm1622_vm14, %v1621_v10, %v1609_v62 }
 0x622   :  { %2159 = vmatmul.msk.f32.gmra.mxu0 %vm126_vm0, %v1626_v43  ;;  %v2248_v43 = vld [vmem:[%s3499_s11] ss:$0 sm:$0xff] }
 0x667   :  { %v1664_v45 = vpop.f32.mrf.mxu0 }
 0x668   :  { %v1665_v47 = vadd.f32 %v2247_v7, %v1664_v45 }
 0x66a   :  { %v3310_v51 = vadd.f32 %v2358_v26, %v1665_v47  ;;  %v2249_v26 = vld [vmem:[%s3500_s12] ss:$0 sm:$0xff] }
 0x66c   :  { %v1682_v49 = vsel %vm126_vm0, %v3310_v51, 0.0 }
 0x66d   :  { %1683 = vadd.xlane.f32.xlu2 %v1682_v49 }
 0x66f   :  { %v1667_v34 = vpop.f32.mrf.mxu0 }
 0x670   :  { %v1668_v18 = vadd.f32 %v2247_v7, %v1667_v34 }
 0x672   :  { %v3314_v40 = vadd.f32 %v2359_v33, %v1668_v18 }
 0x674   :  { %v1685_v24 = vsel %vm126_vm0, %v3314_v40, 0.0 }
 0x675   :  { %1686 = vadd.xlane.f32.xlu1 %v1685_v24 }
 0x678   :  { %v1670_v52 = vpop.f32.mrf.mxu0 }
 0x679   :  { %v1671_v20 = vadd.f32 %v2247_v7, %v1670_v52 }
 0x67b   :  { %v3318_v39 = vadd.f32 %v2360_v0, %v1671_v20 }
 0x67d   :  { %v1688_v2 = vsel %vm126_vm0, %v3318_v39, 0.0 }
 0x67e   :  { %1689 = vadd.xlane.f32.xlu0 %v1688_v2 }
 0x69f   :  { %v1673_v59 = vpop.f32.mrf.mxu0 }
 0x6a0   :  { %v1674_v8 = vadd.f32 %v2247_v7, %v1673_v59 }
 0x6a2   :  { %v3322_v3 = vadd.f32 %v2361_v54, %v1674_v8 }
 0x6a4   :  { %v1691_v5 = vsel %vm126_vm0, %v3322_v3, 0.0 }
 0x6a5   :  { %1692 = vadd.xlane.f32.xlu2 %v1691_v5 }
 0x6e0   :  { %v1684_v50 = vpop.xlane.xlu2 %1683 }
 0x6e1   :  { %v1694_v17 = vmul.f32 %v1684_v50, %v2629_v14 }
 0x6e3   :  { %v1698_v1 = vsub.f32 %v3310_v51, %v1694_v17 }
 0x6e5   :  { %v1702_v6 = vmul.f32 %v1698_v1, %v1698_v1 }
 0x6e7   :  { %v1706_v48 = vsel %vm126_vm0, %v1702_v6, 0.0 }
 0x6e8   :  { %v1687_v41 = vpop.xlane.xlu1 %1686  ;;  %1707 = vadd.xlane.f32.xlu1 %v1706_v48 }
 0x6e9   :  { %v1695_v35 = vmul.f32 %v1687_v41, %v2629_v14 }
 0x6eb   :  { %v3331_v55 = vsub.f32 %v3314_v40, %v1695_v35 }
 0x6ed   :  { %v1703_v38 = vmul.f32 %v3331_v55, %v3331_v55 }
 0x6ef   :  { %v1709_v53 = vsel %vm126_vm0, %v1703_v38, 0.0 }
 0x6f0   :  { %1710 = vadd.xlane.f32.xlu0 %v1709_v53 }
 0x6f1   :  { %v1690_v57 = vpop.xlane.xlu0 %1689 }
 0x6f2   :  { %v1696_v29 = vmul.f32 %v1690_v57, %v2629_v14 }
 0x6f4   :  { %v3338_v15 = vsub.f32 %v3318_v39, %v1696_v29 }
 0x6f6   :  { %v1704_v44 = vmul.f32 %v3338_v15, %v3338_v15 }
 0x6f8   :  { %v1712_v30 = vsel %vm126_vm0, %v1704_v44, 0.0 }
 0x6f9   :  { %1713 = vadd.xlane.f32.xlu2 %v1712_v30 }
 0x718   :  { %v1693_v61 = vpop.xlane.xlu2 %1692 }
 0x719   :  { %v1697_v58 = vmul.f32 %v1693_v61, %v2629_v14 }
 0x71b   :  { %v3345_v60 = vsub.f32 %v3322_v3, %v1697_v58 }
 0x71d   :  { %v1705_v9 = vmul.f32 %v3345_v60, %v3345_v60 }
 0x71f   :  { %v1715_v19 = vsel %vm126_vm0, %v1705_v9, 0.0 }
 0x720   :  { %1716 = vadd.xlane.f32.xlu1 %v1715_v19 }
 0x75b   :  { %v1708_v32 = vpop.xlane.xlu1 %1707 }
 0x75c   :  { %v1718_v31 = vmul.f32 %v1708_v32, %v2629_v14 }
 0x75e   :  { %v1722_v23 = vadd.f32 1e-05, %v1718_v31 }
 0x760   :  { %2342 = vrsqrt.f32 %v1722_v23  ;;  %vm1732_vm1 = vweird.f32 %v1722_v23 }
 0x763   :  { %v1711_v28 = vpop.xlane.xlu0 %1710 }
 0x764   :  { %v1719_v37 = vmul.f32 %v1711_v28, %v2629_v14 }
 0x766   :  { %v2343_v56 = vpop.eup %2342  ;;  %v1723_v11 = vadd.f32 1e-05, %v1719_v37 }
 0x767   :  { %v1727_v16 = vmul.f32 %v2343_v56, %v1722_v23  ;;  %vm1733_vm15 = vweird.f32 %v2343_v56 }
 0x768   :  { %2344 = vrsqrt.f32 %v1723_v11  ;;  %vm1734_vm2 = vmor %vm1732_vm1, %vm1733_vm15  ;;  %vm1742_vm4 = vweird.f32 %v1723_v11 }
 0x769   :  { %v1728_v42 = vmul.f32 %v2343_v56, %v1727_v16 }
 0x76b   :  { %v1729_v4 = vmul.f32 0.5, %v1728_v42 }
 0x76c   :  { %v1714_v21 = vpop.xlane.xlu2 %1713 }
 0x76d   :  { %v1730_v25 = vsub.f32 1.5, %v1729_v4  ;;  %v1720_v27 = vmul.f32 %v1714_v21, %v2629_v14  ;;  %v2015_v21 = vld [vmem:[%s3503_s15 + $0x30] sm:$0xff] }
 0x76e   :  { %v2345_v36 = vpop.eup %2344 }
 0x76f   :  { %v1731_v22 = vmul.f32 %v2343_v56, %v1730_v25  ;;  %v1737_v62 = vmul.f32 %v2345_v36, %v1723_v11  ;;  %v1724_v10 = vadd.f32 1e-05, %v1720_v27  ;;  %vm1743_vm3 = vweird.f32 %v2345_v36  ;;  %v2016_v11 = vld [vmem:[%s3503_s15 + $0x38] sm:$0xff] }
 0x770   :  { %vm1744_vm5 = vmor %vm1742_vm4, %vm1743_vm3  ;;  %2042 = vmatpush.msrb.mxu2 %v2016_v11  ;;  %vm2021_vm3 = vcmask 523264  }
 0x771   :  { %v1735_v7 = vsel %vm1734_vm2, %v2343_v56, %v1731_v22  ;;  %v1738_v45 = vmul.f32 %v2345_v36, %v1737_v62  ;;  %2346 = vrsqrt.f32 %v1724_v10  ;;  %vm1752_vm7 = vweird.f32 %v1724_v10  ;;  %v2014_v22 = vld [vmem:[%s3503_s15 + $0x28] sm:$0xff] }
 0x772   :  { %v1766_v47 = vmul.f32 %v1735_v7, %v1698_v1  ;;  %2043 = vmatpush.msrb.mxu2 %v2015_v21  ;;  %v2013_v7 = vld [vmem:[%s3503_s15 + $0x20] sm:$0xff] }
 0x773   :  { %v1739_v49 = vmul.f32 0.5, %v1738_v45 }
 0x774   :  { %v1773_v34 = vmul.f32 %v2248_v43, %v1766_v47  ;;  %2044 = vmatpush.msrb.mxu2 %v2014_v22 }
 0x775   :  { %v1740_v18 = vsub.f32 1.5, %v1739_v49 }
 0x776   :  { %v1780_v33 = vadd.f32 %v2249_v26, %v1773_v34  ;;  %2045 = vmatpush.msrb.mxu2 %v2013_v7 }
 0x777   :  { %v2347_v24 = vpop.eup %2346  ;;  %v1741_v52 = vmul.f32 %v2345_v36, %v1740_v18  ;;  %v2012_v18 = vld [vmem:[%s3503_s15 + $0x18] sm:$0xff] }
 0x778   :  { %v1747_v20 = vmul.f32 %v2347_v24, %v1724_v10  ;;  %2160 = vmatmul.msk.f32.vlgmr.msra.gmra.mxu1 %vm126_vm0, %v1780_v33  ;;  %vm1753_vm6 = vweird.f32 %v2347_v24  ;;  %2046 = vmatpush.msrb.mxu2 %v2012_v18 }
 0x779   :  { %v1745_v0 = vsel %vm1744_vm5, %v2345_v36, %v1741_v52  ;;  %vm1754_vm8 = vmor %vm1752_vm7, %vm1753_vm6 }
 0x77a   :  { %v1748_v2 = vmul.f32 %v2347_v24, %v1747_v20  ;;  %v1767_v59 = vmul.f32 %v1745_v0, %v3331_v55  ;;  %v2011_v0 = vld [vmem:[%s3503_s15 + $0x10] sm:$0xff] }
 0x77b   :  { %2047 = vmatpush.msrb.mxu2 %v2011_v0 }
 0x77c   :  { %v1749_v8 = vmul.f32 0.5, %v1748_v2  ;;  %v1774_v54 = vmul.f32 %v2248_v43, %v1767_v59 }
 0x77e   :  { %v1750_v5 = vsub.f32 1.5, %v1749_v8  ;;  %v1781_v50 = vadd.f32 %v2249_v26, %v1774_v54 }
 0x780   :  { %v1751_v17 = vmul.f32 %v2347_v24, %v1750_v5  ;;  %2161 = vmatmul.msk.f32.gmra.mxu1 %vm126_vm0, %v1781_v50  ;;  %v2010_v50 = vld [vmem:[%s3503_s15 + $0x8] sm:$0xff] }
 0x781   :  { %2048 = vmatpush.msrb.mxu2 %v2010_v50 }
 0x782   :  { %v1755_v1 = vsel %vm1754_vm8, %v2347_v24, %v1751_v17 }
 0x783   :  { %v1768_v6 = vmul.f32 %v1755_v1, %v3338_v15 }
 0x785   :  { %v1775_v48 = vmul.f32 %v2248_v43, %v1768_v6 }
 0x787   :  { %v1782_v41 = vadd.f32 %v2249_v26, %v1775_v48 }
 0x789   :  { %2162 = vmatmul.msk.f32.gmra.mxu1 %vm126_vm0, %v1782_v41  ;;  %v2009_v41 = vld [vmem:[%s3503_s15] sm:$0xff] }
 0x78a   :  { %2049 = vmatpush.msrb.mxu2 %v2009_v41 }
 0x793   :  { %v1717_v35 = vpop.xlane.xlu1 %1716 }
 0x794   :  { %v1721_v55 = vmul.f32 %v1717_v35, %v2629_v14  ;;  %v3370_v14 = vld [vmem:[%s3502_s14] ss:$0 sm:$0xff] }
 0x796   :  { %v1725_v38 = vadd.f32 1e-05, %v1721_v55 }
 0x798   :  { %2348 = vrsqrt.f32 %v1725_v38  ;;  %vm1762_vm10 = vweird.f32 %v1725_v38 }
 0x79e   :  { %v2349_v53 = vpop.eup %2348 }
 0x79f   :  { %v1757_v57 = vmul.f32 %v2349_v53, %v1725_v38  ;;  %vm1763_vm9 = vweird.f32 %v2349_v53 }
 0x7a0   :  { %vm1764_vm11 = vmor %vm1762_vm10, %vm1763_vm9 }
 0x7a1   :  { %v1758_v29 = vmul.f32 %v2349_v53, %v1757_v57 }
 0x7a3   :  { %v1759_v44 = vmul.f32 0.5, %v1758_v29 }
 0x7a5   :  { %v1760_v30 = vsub.f32 1.5, %v1759_v44 }
 0x7a7   :  { %v1761_v61 = vmul.f32 %v2349_v53, %v1760_v30 }
 0x7a9   :  { %v1765_v58 = vsel %vm1764_vm11, %v2349_v53, %v1761_v61 }
 0x7aa   :  { %v1769_v15 = vmul.f32 %v1765_v58, %v3345_v60 }
 0x7ac   :  { %v1776_v9 = vmul.f32 %v2248_v43, %v1769_v15 }
 0x7ae   :  { %v1783_v19 = vadd.f32 %v2249_v26, %v1776_v9 }
 0x7b0   :  { %2163 = vmatmul.msk.f32.gmra.mxu1 %vm126_vm0, %v1783_v19 }
 0x7f5   :  { %v1821_v12 = vpop.f32.mrf.mxu1 }
 0x7f6   :  { %v3373_v46 = vadd.f32 %v3370_v14, %v1821_v12 }
 0x7f8   :  { %v3376_v63 = vmul.f32 0.70710677, %v3373_v46 }
 0x7fa   :  { %v1841_v13 = vmul.f32 %v3376_v63, %v3376_v63 }
 0x7fc   :  { %v3380_v60 = vmin.f32 %v1841_v13, 16.0 }
 0x7fd   :  { %v1824_v32 = vpop.f32.mrf.mxu1 }
 0x7fe   :  { %v1843_v31 = vmul.f32 2.1237322e-06, %v3380_v60  ;;  %v1854_v23 = vmul.f32 3.8918573e-05, %v3380_v60  ;;  %v3385_v28 = vadd.f32 %v3370_v14, %v1824_v32 }
 0x800   :  { %v1844_v37 = vadd.f32 0.00028619796, %v1843_v31  ;;  %v1855_v56 = vadd.f32 0.001143296, %v1854_v23  ;;  %v3391_v16 = vmul.f32 0.70710677, %v3385_v28 }
 0x802   :  { %v1845_v42 = vmul.f32 %v1844_v37, %v3380_v60  ;;  %v1856_v4 = vmul.f32 %v1855_v56, %v3380_v60  ;;  %v1881_v25 = vmul.f32 %v3391_v16, %v3391_v16 }
 0x804   :  { %v1846_v27 = vadd.f32 0.0036580483, %v1845_v42  ;;  %v1857_v36 = vadd.f32 0.014752088, %v1856_v4  ;;  %v3403_v62 = vmin.f32 %v1881_v25, 16.0 }
 0x806   :  { %v1858_v10 = vmul.f32 %v1857_v36, %v3380_v60  ;;  %v1827_v43 = vpop.f32.mrf.mxu1  ;;  %v1883_v45 = vmul.f32 2.1237322e-06, %v3403_v62  ;;  %v1894_v47 = vmul.f32 3.8918573e-05, %v3403_v62  ;;  %v1847_v49 = vmul.f32 %v1846_v27, %v3380_v60 }
 0x807   :  { %v3412_v26 = vadd.f32 %v3370_v14, %v1827_v43 }
 0x808   :  { %v1859_v34 = vadd.f32 0.112945676, %v1858_v10  ;;  %v1884_v33 = vadd.f32 0.00028619796, %v1883_v45  ;;  %v1895_v24 = vadd.f32 0.001143296, %v1894_v47 }
 0x809   :  { %v3420_v20 = vmul.f32 0.70710677, %v3412_v26  ;;  %v1848_v8 = vadd.f32 0.05243302, %v1847_v49 }
 0x80a   :  { %v1860_v52 = vmul.f32 %v1859_v34, %v3380_v60  ;;  %v1885_v2 = vmul.f32 %v1884_v33, %v3403_v62  ;;  %v1896_v59 = vmul.f32 %v1895_v24, %v3403_v62 }
 0x80b   :  { %v1921_v5 = vmul.f32 %v3420_v20, %v3420_v20  ;;  %v1849_v55 = vmul.f32 %v1848_v8, %v3380_v60 }
 0x80c   :  { %v1861_v54 = vadd.f32 0.4994258, %v1860_v52  ;;  %v1897_v17 = vadd.f32 0.014752088, %v1896_v59  ;;  %v1886_v6 = vadd.f32 0.0036580483, %v1885_v2 }
 0x80d   :  { %v3433_v48 = vmin.f32 %v1921_v5, 16.0  ;;  %v1850_v58 = vadd.f32 0.18741608, %v1849_v55  ;;  %v1833_v55 = vmul.f32 0.5, %v3373_v46 }
 0x80e   :  { %v1862_v1 = vmul.f32 %v1861_v54, %v3380_v60  ;;  %v1898_v35 = vmul.f32 %v1897_v17, %v3403_v62  ;;  %v1887_v44 = vmul.f32 %v1886_v6, %v3403_v62 }
 0x80f   :  { %v1923_v53 = vmul.f32 2.1237322e-06, %v3433_v48  ;;  %v1934_v29 = vmul.f32 3.8918573e-05, %v3433_v48  ;;  %v1851_v23 = vmul.f32 %v1850_v58, %v3380_v60 }
 0x810   :  { %v1863_v38 = vadd.f32 1.0, %v1862_v1  ;;  %v1899_v57 = vadd.f32 0.112945676, %v1898_v35  ;;  %v1888_v12 = vadd.f32 0.05243302, %v1887_v44 }
 0x811   :  { %v1924_v61 = vadd.f32 0.00028619796, %v1923_v53  ;;  %v1935_v15 = vadd.f32 0.001143296, %v1934_v29  ;;  %v1852_v27 = vadd.f32 1.1283791, %v1851_v23 }
 0x812   :  { %2350 = vrcp.f32 %v1863_v38  ;;  %v1900_v30 = vmul.f32 %v1899_v57, %v3403_v62  ;;  %v1889_v4 = vmul.f32 %v1888_v12, %v3403_v62  ;;  %v1873_v36 = vand.u32 2147483647, %v1863_v38 }
 0x813   :  { %v1925_v19 = vmul.f32 %v1924_v61, %v3433_v48  ;;  %v1936_v13 = vmul.f32 %v1935_v15, %v3433_v48  ;;  %v1875_v22 = vand.u32 2147483648, %v1863_v38  ;;  %vm1869_vm13 = vweird.f32 %v1863_v38 }
 0x814   :  { %v1901_v9 = vadd.f32 0.4994258, %v1900_v30  ;;  %v1890_v45 = vadd.f32 0.18741608, %v1889_v4  ;;  %v1853_v49 = vmul.f32 %v1852_v27, %v3376_v63  ;;  %vm1874_vm15 = vcmp.eq.f32.partialorder %v1873_v36, 8.507059e+37 }
 0x815   :  { %v1937_v37 = vadd.f32 0.014752088, %v1936_v13  ;;  %v1926_v42 = vadd.f32 0.0036580483, %v1925_v19  ;;  %v1876_v34 = vor.u32 1.1754944e-38, %v1875_v22 }
 0x816   :  { %v1902_v32 = vmul.f32 %v1901_v9, %v3403_v62  ;;  %v1891_v2 = vmul.f32 %v1890_v45, %v3403_v62 }
 0x817   :  { %v1938_v21 = vmul.f32 %v1937_v37, %v3433_v48  ;;  %v1927_v43 = vmul.f32 %v1926_v42, %v3433_v48 }
 0x818   :  { %v2351_v31 = vpop.eup %2350  ;;  %v1903_v11 = vadd.f32 1.0, %v1902_v32  ;;  %v1892_v6 = vadd.f32 1.1283791, %v1891_v2  ;;  %v1834_v32 = vmul.f32 0.5, %v3385_v28 }
 0x819   :  { %v1865_v56 = vmul.f32 %v2351_v31, %v1863_v38  ;;  %vm1870_vm12 = vweird.f32 %v2351_v31  ;;  %v1939_v7 = vadd.f32 0.112945676, %v1938_v21  ;;  %v1928_v24 = vadd.f32 0.05243302, %v1927_v43 }
 0x81a   :  { %2352 = vrcp.f32 %v1903_v11  ;;  %vm1871_vm14 = vmor %vm1869_vm13, %vm1870_vm12  ;;  %v1915_v17 = vand.u32 2147483648, %v1903_v11  ;;  %v1913_v35 = vand.u32 2147483647, %v1903_v11  ;;  %vm1909_vm2 = vweird.f32 %v1903_v11 }
 0x81b   :  { %v1866_v25 = vsub.f32 1.0, %v1865_v56  ;;  %v1940_v47 = vmul.f32 %v1939_v7, %v3433_v48  ;;  %v1929_v1 = vmul.f32 %v1928_v24, %v3433_v48  ;;  %v1893_v44 = vmul.f32 %v1892_v6, %v3391_v16 }
 0x81c   :  { %v1916_v57 = vor.u32 1.1754944e-38, %v1915_v17  ;;  %vm1914_vm5 = vcmp.eq.f32.partialorder %v1913_v35, 8.507059e+37 }
 0x81d   :  { %v1867_v10 = vmul.f32 %v2351_v31, %v1866_v25  ;;  %v1941_v52 = vadd.f32 0.4994258, %v1940_v47  ;;  %v1930_v29 = vadd.f32 0.18741608, %v1929_v1 }
 0x81f   :  { %v1868_v60 = vadd.f32 %v2351_v31, %v1867_v10  ;;  %v1942_v54 = vmul.f32 %v1941_v52, %v3433_v48  ;;  %v1931_v46 = vmul.f32 %v1930_v29, %v3433_v48 }
 0x820   :  { %v2353_v18 = vpop.eup %2352 }
 0x821   :  { %v1872_v33 = vsel %vm1871_vm14, %v2351_v31, %v1868_v60  ;;  %v1905_v59 = vmul.f32 %v2353_v18, %v1903_v11  ;;  %v1943_v63 = vadd.f32 1.0, %v1942_v54  ;;  %vm1910_vm1 = vweird.f32 %v2353_v18 }
 0x822   :  { %v1877_v0 = vsel %vm1874_vm15, %v1876_v34, %v1872_v33  ;;  %vm1911_vm4 = vmor %vm1909_vm2, %vm1910_vm1  ;;  %v1932_v37 = vadd.f32 1.1283791, %v1931_v46  ;;  %v1835_v34 = vmul.f32 0.5, %v3412_v26 }
 0x823   :  { %v1878_v8 = vmul.f32 %v1877_v0, %v1853_v49  ;;  %v1906_v5 = vsub.f32 1.0, %v1905_v59  ;;  %2354 = vrcp.f32 %v1943_v63  ;;  %v1953_v56 = vand.u32 2147483647, %v1943_v63 }
 0x824   :  { %v1955_v11 = vand.u32 2147483648, %v1943_v63  ;;  %vm1949_vm7 = vweird.f32 %v1943_v63 }
 0x825   :  { %v2164_v50 = vclamps-f32 %v1878_v8, 1.0  ;;  %v1907_v41 = vmul.f32 %v2353_v18, %v1906_v5  ;;  %vm1954_vm9 = vcmp.eq.f32.partialorder %v1953_v56, 8.507059e+37 }
 0x826   :  { %v1956_v28 = vor.u32 1.1754944e-38, %v1955_v11 }
 0x827   :  { %v2001_v38 = vadd.f32 1.0, %v2164_v50  ;;  %v1908_v53 = vadd.f32 %v2353_v18, %v1907_v41 }
 0x829   :  { %v2005_v62 = vmul.f32 %v2001_v38, %v1833_v55  ;;  %v1912_v30 = vsel %vm1911_vm4, %v2353_v18, %v1908_v53  ;;  %v2355_v15 = vpop.eup %2354 }
 0x82a   :  { %v1917_v61 = vsel %vm1914_vm5, %v1916_v57, %v1912_v30  ;;  %v1945_v19 = vmul.f32 %v2355_v15, %v1943_v63  ;;  %vm1950_vm6 = vweird.f32 %v2355_v15 }
 0x82b   :  { %2168 = vmatmul.msk.f32.vlgmr.msrb.gmra.mxu2 %vm2021_vm3, %v2005_v62  ;;  %v1918_v58 = vmul.f32 %v1917_v61, %v1893_v44  ;;  %vm1951_vm8 = vmor %vm1949_vm7, %vm1950_vm6 }
 0x82c   :  { %v1946_v31 = vsub.f32 1.0, %v1945_v19  ;;  %v2251_v19 = vld [vmem:[%s3504_s16] ss:$0 sm:$0xff]  ;;  %s2510_s16 = smov [#allocation10]  }
 0x82d   :  { %v1830_v9 = vpop.f32.mrf.mxu1  ;;  %v2165_v13 = vclamps-f32 %v1918_v58, 1.0  ;;  %s2075_s26 = sshll.u32 %s2510_s16, 4  ;;  %s2076_s26 = int_to_ptr.vmem [resolvable:$true] %s2075_s26 }
 0x82e   :  { %v3461_v12 = vadd.f32 %v3370_v14, %v1830_v9  ;;  %v1947_v42 = vmul.f32 %v2355_v15, %v1946_v31  ;;  %v1933_v14 = vmul.f32 %v1932_v37, %v3420_v20 }
 0x82f   :  { %v2002_v23 = vadd.f32 1.0, %v2165_v13 }
 0x830   :  { %v1840_v16 = vmul.f32 0.70710677, %v3461_v12  ;;  %v1948_v48 = vadd.f32 %v2355_v15, %v1947_v42 }
 0x831   :  { %v2006_v21 = vmul.f32 %v2002_v23, %v1834_v32 }
 0x832   :  { %v1961_v4 = vmul.f32 %v1840_v16, %v1840_v16  ;;  %v1952_v27 = vsel %vm1951_vm8, %v2355_v15, %v1948_v48  ;;  %v1836_v15 = vmul.f32 0.5, %v3461_v12 }
 0x833   :  { %2169 = vmatmul.msk.f32.gmra.mxu2 %vm2021_vm3, %v2006_v21  ;;  %v1957_v10 = vsel %vm1954_vm9, %v1956_v28, %v1952_v27 }
 0x834   :  { %v1962_v25 = vmin.f32 %v1961_v4, 16.0  ;;  %v1958_v43 = vmul.f32 %v1957_v10, %v1933_v14 }
 0x836   :  { %v1963_v36 = vmul.f32 2.1237322e-06, %v1962_v25  ;;  %v1974_v22 = vmul.f32 3.8918573e-05, %v1962_v25  ;;  %v2166_v49 = vclamps-f32 %v1958_v43, 1.0 }
 0x838   :  { %v1964_v7 = vadd.f32 0.00028619796, %v1963_v36  ;;  %v1975_v45 = vadd.f32 0.001143296, %v1974_v22  ;;  %v2003_v33 = vadd.f32 1.0, %v2166_v49 }
 0x83a   :  { %v1965_v60 = vmul.f32 %v1964_v7, %v1962_v25  ;;  %v1976_v47 = vmul.f32 %v1975_v45, %v1962_v25  ;;  %v2007_v20 = vmul.f32 %v2003_v33, %v1835_v34 }
 0x83c   :  { %v1977_v18 = vadd.f32 0.014752088, %v1976_v47  ;;  %v1966_v24 = vadd.f32 0.0036580483, %v1965_v60  ;;  %2170 = vmatmul.msk.f32.gmra.mxu2 %vm2021_vm3, %v2007_v20 }
 0x83e   :  { %v1978_v52 = vmul.f32 %v1977_v18, %v1962_v25  ;;  %v1967_v2 = vmul.f32 %v1966_v24, %v1962_v25 }
 0x840   :  { %v1979_v0 = vadd.f32 0.112945676, %v1978_v52  ;;  %v1968_v54 = vadd.f32 0.05243302, %v1967_v2 }
 0x842   :  { %v1980_v59 = vmul.f32 %v1979_v0, %v1962_v25  ;;  %v1969_v17 = vmul.f32 %v1968_v54, %v1962_v25 }
 0x844   :  { %v1981_v8 = vadd.f32 0.4994258, %v1980_v59  ;;  %v1970_v1 = vadd.f32 0.18741608, %v1969_v17 }
 0x846   :  { %v1982_v5 = vmul.f32 %v1981_v8, %v1962_v25  ;;  %v1971_v6 = vmul.f32 %v1970_v1, %v1962_v25 }
 0x848   :  { %v1983_v50 = vadd.f32 1.0, %v1982_v5  ;;  %v1972_v55 = vadd.f32 1.1283791, %v1971_v6 }
 0x84a   :  { %2356 = vrcp.f32 %v1983_v50  ;;  %v1995_v35 = vand.u32 2147483648, %v1983_v50  ;;  %v1993_v53 = vand.u32 2147483647, %v1983_v50  ;;  %vm1989_vm11 = vweird.f32 %v1983_v50 }
 0x84b   :  { %v1973_v29 = vmul.f32 %v1972_v55, %v1840_v16 }
 0x84c   :  { %v1996_v57 = vor.u32 1.1754944e-38, %v1995_v35  ;;  %vm1994_vm13 = vcmp.eq.f32.partialorder %v1993_v53, 8.507059e+37 }
 0x850   :  { %v2357_v63 = vpop.eup %2356 }
 0x851   :  { %v1985_v26 = vmul.f32 %v2357_v63, %v1983_v50  ;;  %vm1990_vm10 = vweird.f32 %v2357_v63 }
 0x852   :  { %vm1991_vm12 = vmor %vm1989_vm11, %vm1990_vm10 }
 0x853   :  { %v1986_v41 = vsub.f32 1.0, %v1985_v26 }
 0x855   :  { %v1987_v38 = vmul.f32 %v2357_v63, %v1986_v41 }
 0x857   :  { %v1988_v62 = vadd.f32 %v2357_v63, %v1987_v38 }
 0x859   :  { %v1992_v44 = vsel %vm1991_vm12, %v2357_v63, %v1988_v62 }
 0x85a   :  { %v1997_v30 = vsel %vm1994_vm13, %v1996_v57, %v1992_v44 }
 0x85b   :  { %v1998_v61 = vmul.f32 %v1997_v30, %v1973_v29 }
 0x85d   :  { %v2167_v58 = vclamps-f32 %v1998_v61, 1.0 }
 0x85f   :  { %v2004_v46 = vadd.f32 1.0, %v2167_v58 }
 0x861   :  { %v2008_v9 = vmul.f32 %v2004_v46, %v1836_v15 }
 0x863   :  { %2171 = vmatmul.msk.f32.gmra.mxu2 %vm2021_vm3, %v2008_v9 }
 0x8ae   :  { %v2051_v13 = vpop.f32.mrf.mxu2 }
 0x8af   :  { %v2052_v32 = vadd.f32 %v2251_v19, %v2051_v13 }
 0x8b1   :  { %v2063_v31 = vadd.f32 %v2052_v32, %v3310_v51 }
 0x8b3   :  { %2067 = vst.msk [vmem:[#allocation10] sm:$0xff] %vm126_vm0, %v2063_v31 }
 0x8b6   :  { %v2054_v16 = vpop.f32.mrf.mxu2 }
 0x8b7   :  { %v2055_v23 = vadd.f32 %v2251_v19, %v2054_v16 }
 0x8b9   :  { %v2064_v37 = vadd.f32 %v2055_v23, %v3314_v40 }
 0x8bb   :  { %2068 = vst.msk [vmem:[#allocation10 + $0x8] sm:$0xff] %vm126_vm0, %v2064_v37 }
 0x8bf   :  { %v2057_v12 = vpop.f32.mrf.mxu2 }
 0x8c0   :  { %v2058_v56 = vadd.f32 %v2251_v19, %v2057_v12 }
 0x8c2   :  { %v2065_v11 = vadd.f32 %v2058_v56, %v3318_v39 }
 0x8c4   :  { %2069 = vst.msk [vmem:[#allocation10 + $0x10] sm:$0xff] %vm126_vm0, %v2065_v11 }
 0x8e6   :  { %v2060_v42 = vpop.f32.mrf.mxu2 }
 0x8e7   :  { %v2061_v51 = vadd.f32 %v2251_v19, %v2060_v42 }
 0x8e9   :  { %v2066_v4 = vadd.f32 %v2061_v51, %v3322_v3 }
 0x8eb   :  { %2070 = vst.msk [vmem:[#allocation10 + $0x18] sm:$0xff] %vm126_vm0, %v2066_v4 }
 0x8ec   :  { %2083 = dma.vmem_to_hbm [thread:$0]  %s2076_s26, 512, %s2078_s10, [#allocation4], %s2491_s19, %s2491_s19, %s2492_s1  }
 0x8ed   :  { %2488 = dma.done.wait [#allocation4], 512  }
 0x8ee   :  { %2489 = vsyncadd [#allocation4], 4294966784 }
 0x8ef   :  { %2088 = vsyncpa [#allocation3], 1 }
 0x8f0   :  { %2089 = vsyncpa [#allocation6], 1 }
 0x8f1   :  { %2090 = vsyncpa [#allocation9], 1 }
 0x8f2   :  { %2091 = vsyncpa [#allocation4], 1 }

</bundles_post_ra>
